<compile_context>
chip_gen: v7x
topology: tpu7x:2x2x1
jax: 0.10.0
libtpu: 0.0.40
codegen_flags: <defaults>
</compile_context>

<pallas_src>
import functools

import jax
import jax.numpy as jnp
from jax.experimental import pallas as pl
from jax.experimental.pallas import tpu as pltpu


def _round_up(v, m):
    return ((v + m - 1) // m) * m


# ----------------------------------------------------------------------------
# Pallas kernel: fused 6-layer GCN forward (all operands lane/sublane aligned)
#   refs: a_hat, x, (w1, b1, ..., w6, b6), out
# ----------------------------------------------------------------------------
def _gcn_fused_kernel(num_classes, a_ref, x_ref, *rest):
    o_ref = rest[-1]
    wb_refs = rest[:-1]
    num_layers = len(wb_refs) // 2

    a = a_ref[...]                               # bf16 (Np, Np), loaded once
    h_lo = x_ref[...]                            # bf16 (Np, F0p) first-layer MXU operand
    h = None                                     # f32 hidden state after layer 0

    for layer in range(num_layers):
        w = wb_refs[2 * layer][...]              # bf16 (F_in_p, F_out_p)
        b = wb_refs[2 * layer + 1][...]          # f32  (1, F_out_p)
        f_in, f_out = w.shape                    # static (trace-time) dims

        if layer > 0:
            h_lo = h.astype(jnp.bfloat16)

        if f_in < f_out:
            # Aggregate first: N^2 contraction runs at the narrower width F_in.
            ah = jnp.dot(a, h_lo, preferred_element_type=jnp.float32)
            h = jnp.dot(ah.astype(jnp.bfloat16), w,
                        preferred_element_type=jnp.float32)
        else:
            # Transform first: N^2 contraction runs at width F_out <= F_in.
            hw = jnp.dot(h_lo, w, preferred_element_type=jnp.float32)
            h = jnp.dot(a, hw.astype(jnp.bfloat16),
                        preferred_element_type=jnp.float32)

        h = h + b                                # f32 bias add

        if layer < num_layers - 1:
            h = jnp.maximum(h, 0.0)              # ReLU (dropout = identity)
        else:
            # Mask pad class lanes so the XLU reductions only see real logits.
            lane = jax.lax.broadcasted_iota(jnp.int32, h.shape, 1)
            h = jnp.where(lane < num_classes, h, -jnp.inf)
            # log_softmax over classes, in f32
            m = jnp.max(h, axis=-1, keepdims=True)
            shifted = h - m
            lse = jnp.log(jnp.sum(jnp.exp(shifted), axis=-1, keepdims=True))
            h = shifted - lse

    o_ref[...] = h.astype(o_ref.dtype)           # lane-dense f32 store


# ----------------------------------------------------------------------------
# Glue: dense normalized adjacency (PyG gcn_norm + add_remaining_self_loops)
# ----------------------------------------------------------------------------
def build_normalized_adjacency(edge_index, num_nodes):
    src, dst = edge_index[0], edge_index[1]
    adj = jnp.zeros((num_nodes, num_nodes), jnp.float32)
    # message passing: out[i] += norm * x[j] for edge j -> i  =>  A[dst, src] += 1
    # (duplicate edges are counted with multiplicity, matching PyG semantics)
    adj = adj.at[dst, src].add(1.0)
    # add_remaining_self_loops: only add a self-loop where none exists
    diag = jnp.diagonal(adj)
    adj = adj + jnp.diag(jnp.where(diag > 0, 0.0, 1.0))
    deg = jnp.sum(adj, axis=1)                   # in-degree incl. self-loop
    dinv = jnp.where(deg > 0, 1.0 / jnp.sqrt(deg), 0.0)
    # A_hat[i, j] = dinv[i] * A[i, j] * dinv[j]
    return dinv[:, None] * adj * dinv[None, :]


# ----------------------------------------------------------------------------
# Parameter init (deterministic, Glorot like GCNConv, zero bias)
# ----------------------------------------------------------------------------
def init_gcn_params(key, num_features, hid_size, num_classes):
    dims = [num_features] + [hid_size] * 5 + [num_classes]
    params = []
    for i in range(6):
        key, sub = jax.random.split(key)
        fan_in, fan_out = dims[i], dims[i + 1]
        limit = jnp.sqrt(6.0 / (fan_in + fan_out))
        w = jax.random.uniform(sub, (fan_in, fan_out), jnp.float32, -limit, limit)
        b = jnp.zeros((1, fan_out), jnp.float32)
        params.append((w, b))
    return params


# ----------------------------------------------------------------------------
# Full GCN forward (single fused pallas_call, lane-dense padded operands)
# ----------------------------------------------------------------------------
def gcn_forward(x, edge_index, params):
    n, f0 = x.shape
    num_classes = params[-1][0].shape[1]

    # ---- pad everything to (8,128)/lane-dense shapes -----------------------
    n_pad = _round_up(n, 128)
    c_pad = _round_up(num_classes, 128)

    # A_hat: normalize in f32 (degree precision), feed the MXU in bf16.
    a_hat = build_normalized_adjacency(edge_index, n)
    a_pad = jnp.zeros((n_pad, n_pad), jnp.float32).at[:n, :n].set(a_hat)
    a_pad = a_pad.astype(jnp.bfloat16)

    f0_pad = _round_up(f0, 128)
    x_pad = jnp.zeros((n_pad, f0_pad), jnp.float32).at[:n, :f0].set(x)
    x_pad = x_pad.astype(jnp.bfloat16)           # bf16 straight into the MXU

    flat = []
    max_f_pad = f0_pad
    for w, b in params:
        fi, fo = w.shape
        fi_p, fo_p = _round_up(fi, 128), _round_up(fo, 128)
        max_f_pad = max(max_f_pad, fi_p, fo_p)
        w_p = jnp.zeros((fi_p, fo_p), jnp.float32).at[:fi, :fo].set(w)
        b_p = jnp.zeros((1, fo_p), jnp.float32).at[:, :fo].set(b[0])
        flat.append(w_p.astype(jnp.bfloat16))    # MXU operand
        flat.append(b_p)                         # f32 bias

    # ---- VMEM budget: everything must stay resident ------------------------
    bytes_resident = (
        a_pad.size * 2 + x_pad.size * 2
        + sum(int(t.size) * t.dtype.itemsize for t in flat)
        + n_pad * c_pad * 4                      # output slab
        + 4 * n_pad * max_f_pad * 4              # f32/bf16 intermediates (H, AH/HW)
    )
    budget = 48 * (1 << 20)                      # conservative for v7x (64 MiB phys)
    if int(bytes_resident * 1.5) > budget:
        # TODO(synk): add row-tiled / streaming A_hat path for large graphs.
        raise NotImplementedError(
            "graph too large for the fully VMEM-resident dense-A_hat kernel")
    vmem_limit = max(min(int(bytes_resident * 1.5) + (2 << 20), budget), 16 << 20)

    n_inputs = 2 + len(flat)
    out_pad = pl.pallas_call(
        functools.partial(_gcn_fused_kernel, num_classes),
        out_shape=jax.ShapeDtypeStruct((n_pad, c_pad), jnp.float32),
        in_specs=[pl.BlockSpec(memory_space=pltpu.VMEM)] * n_inputs,
        out_specs=pl.BlockSpec(memory_space=pltpu.VMEM),
        compiler_params=pltpu.CompilerParams(vmem_limit_bytes=vmem_limit),
    )(a_pad, x_pad, *flat)

    # slice the lane-dense slab back to the real (N, C) logits
    return out_pad[:n, :num_classes]


if __name__ == "__main__":
    key = jax.random.PRNGKey(0)

    num_nodes = 32
    num_features = 16
    hid_size = 32
    num_classes = 8
    num_edges = 64

    k_x, k_e, k_p = jax.random.split(key, 3)
    x = jax.random.normal(k_x, (num_nodes, num_features), jnp.float32)
    edge_index = jax.random.randint(k_e, (2, num_edges), 0, num_nodes, jnp.int32)
    params = init_gcn_params(k_p, num_features, hid_size, num_classes)

    out = gcn_forward(x, edge_index, params)
    out = jax.block_until_ready(out)

    assert out.shape == (num_nodes, num_classes)
    # rows of log_softmax should exp-sum to ~1
    row_sums = jnp.sum(jnp.exp(out), axis=-1)
    assert bool(jnp.all(jnp.abs(row_sums - 1.0) < 1e-3))
    assert bool(jnp.all(jnp.isfinite(out)))
    print("KERNEL_OK")
</pallas_src>

<mosaic_0001>
module attributes {stable_mosaic.version = 11 : i64} {
  func.func @_gcn_fused_kernel(%arg0: memref<128x128xbf16, #tpu.memory_space<vmem>>, %arg1: memref<128x128xbf16, #tpu.memory_space<vmem>>, %arg2: memref<128x128xbf16, #tpu.memory_space<vmem>>, %arg3: memref<1x128xf32, #tpu.memory_space<vmem>>, %arg4: memref<128x128xbf16, #tpu.memory_space<vmem>>, %arg5: memref<1x128xf32, #tpu.memory_space<vmem>>, %arg6: memref<128x128xbf16, #tpu.memory_space<vmem>>, %arg7: memref<1x128xf32, #tpu.memory_space<vmem>>, %arg8: memref<128x128xbf16, #tpu.memory_space<vmem>>, %arg9: memref<1x128xf32, #tpu.memory_space<vmem>>, %arg10: memref<128x128xbf16, #tpu.memory_space<vmem>>, %arg11: memref<1x128xf32, #tpu.memory_space<vmem>>, %arg12: memref<128x128xbf16, #tpu.memory_space<vmem>>, %arg13: memref<1x128xf32, #tpu.memory_space<vmem>>, %arg14: memref<128x128xf32, #tpu.memory_space<vmem>>) attributes {dimension_semantics = [], scalar_prefetch = 0 : i64, scratch_operands = 0 : i64, tpu.core_type = #tpu.core_type<tc>} {
    %c0 = arith.constant 0 : index
    %c0_0 = arith.constant 0 : index
    %0 = vector.load %arg0[%c0, %c0_0] : memref<128x128xbf16, #tpu.memory_space<vmem>>, vector<128x128xbf16>
    %c0_1 = arith.constant 0 : index
    %c0_2 = arith.constant 0 : index
    %1 = vector.load %arg1[%c0_1, %c0_2] : memref<128x128xbf16, #tpu.memory_space<vmem>>, vector<128x128xbf16>
    %c0_3 = arith.constant 0 : index
    %c0_4 = arith.constant 0 : index
    %2 = vector.load %arg2[%c0_3, %c0_4] : memref<128x128xbf16, #tpu.memory_space<vmem>>, vector<128x128xbf16>
    %c0_5 = arith.constant 0 : index
    %c0_6 = arith.constant 0 : index
    %3 = vector.load %arg3[%c0_5, %c0_6] : memref<1x128xf32, #tpu.memory_space<vmem>>, vector<1x128xf32>
    %cst = arith.constant dense<0.000000e+00> : vector<128x128xf32>
    %4 = tpu.matmul %1, %2, %cst {dimension_numbers = #tpu.dot_dimension_numbers<[1], [0], [0], [1], [0, 0, 1, 1], [], []>} : vector<128x128xbf16>, vector<128x128xbf16>, vector<128x128xf32> -> vector<128x128xf32>
    %5 = arith.truncf %4 : vector<128x128xf32> to vector<128x128xbf16>
    %cst_7 = arith.constant dense<0.000000e+00> : vector<128x128xf32>
    %6 = tpu.matmul %0, %5, %cst_7 {dimension_numbers = #tpu.dot_dimension_numbers<[1], [0], [0], [1], [0, 0, 1, 1], [], []>} : vector<128x128xbf16>, vector<128x128xbf16>, vector<128x128xf32> -> vector<128x128xf32>
    %7 = vector.broadcast %3 : vector<1x128xf32> to vector<128x128xf32>
    %8 = arith.addf %6, %7 : vector<128x128xf32>
    %cst_8 = arith.constant 0.000000e+00 : f32
    %9 = vector.broadcast %cst_8 : f32 to vector<128x128xf32>
    %10 = arith.maximumf %8, %9 : vector<128x128xf32>
    %c0_9 = arith.constant 0 : index
    %c0_10 = arith.constant 0 : index
    %11 = vector.load %arg4[%c0_9, %c0_10] : memref<128x128xbf16, #tpu.memory_space<vmem>>, vector<128x128xbf16>
    %c0_11 = arith.constant 0 : index
    %c0_12 = arith.constant 0 : index
    %12 = vector.load %arg5[%c0_11, %c0_12] : memref<1x128xf32, #tpu.memory_space<vmem>>, vector<1x128xf32>
    %13 = arith.truncf %10 : vector<128x128xf32> to vector<128x128xbf16>
    %cst_13 = arith.constant dense<0.000000e+00> : vector<128x128xf32>
    %14 = tpu.matmul %13, %11, %cst_13 {dimension_numbers = #tpu.dot_dimension_numbers<[1], [0], [0], [1], [0, 0, 1, 1], [], []>} : vector<128x128xbf16>, vector<128x128xbf16>, vector<128x128xf32> -> vector<128x128xf32>
    %15 = arith.truncf %14 : vector<128x128xf32> to vector<128x128xbf16>
    %cst_14 = arith.constant dense<0.000000e+00> : vector<128x128xf32>
    %16 = tpu.matmul %0, %15, %cst_14 {dimension_numbers = #tpu.dot_dimension_numbers<[1], [0], [0], [1], [0, 0, 1, 1], [], []>} : vector<128x128xbf16>, vector<128x128xbf16>, vector<128x128xf32> -> vector<128x128xf32>
    %17 = vector.broadcast %12 : vector<1x128xf32> to vector<128x128xf32>
    %18 = arith.addf %16, %17 : vector<128x128xf32>
    %cst_15 = arith.constant 0.000000e+00 : f32
    %19 = vector.broadcast %cst_15 : f32 to vector<128x128xf32>
    %20 = arith.maximumf %18, %19 : vector<128x128xf32>
    %c0_16 = arith.constant 0 : index
    %c0_17 = arith.constant 0 : index
    %21 = vector.load %arg6[%c0_16, %c0_17] : memref<128x128xbf16, #tpu.memory_space<vmem>>, vector<128x128xbf16>
    %c0_18 = arith.constant 0 : index
    %c0_19 = arith.constant 0 : index
    %22 = vector.load %arg7[%c0_18, %c0_19] : memref<1x128xf32, #tpu.memory_space<vmem>>, vector<1x128xf32>
    %23 = arith.truncf %20 : vector<128x128xf32> to vector<128x128xbf16>
    %cst_20 = arith.constant dense<0.000000e+00> : vector<128x128xf32>
    %24 = tpu.matmul %23, %21, %cst_20 {dimension_numbers = #tpu.dot_dimension_numbers<[1], [0], [0], [1], [0, 0, 1, 1], [], []>} : vector<128x128xbf16>, vector<128x128xbf16>, vector<128x128xf32> -> vector<128x128xf32>
    %25 = arith.truncf %24 : vector<128x128xf32> to vector<128x128xbf16>
    %cst_21 = arith.constant dense<0.000000e+00> : vector<128x128xf32>
    %26 = tpu.matmul %0, %25, %cst_21 {dimension_numbers = #tpu.dot_dimension_numbers<[1], [0], [0], [1], [0, 0, 1, 1], [], []>} : vector<128x128xbf16>, vector<128x128xbf16>, vector<128x128xf32> -> vector<128x128xf32>
    %27 = vector.broadcast %22 : vector<1x128xf32> to vector<128x128xf32>
    %28 = arith.addf %26, %27 : vector<128x128xf32>
    %cst_22 = arith.constant 0.000000e+00 : f32
    %29 = vector.broadcast %cst_22 : f32 to vector<128x128xf32>
    %30 = arith.maximumf %28, %29 : vector<128x128xf32>
    %c0_23 = arith.constant 0 : index
    %c0_24 = arith.constant 0 : index
    %31 = vector.load %arg8[%c0_23, %c0_24] : memref<128x128xbf16, #tpu.memory_space<vmem>>, vector<128x128xbf16>
    %c0_25 = arith.constant 0 : index
    %c0_26 = arith.constant 0 : index
    %32 = vector.load %arg9[%c0_25, %c0_26] : memref<1x128xf32, #tpu.memory_space<vmem>>, vector<1x128xf32>
    %33 = arith.truncf %30 : vector<128x128xf32> to vector<128x128xbf16>
    %cst_27 = arith.constant dense<0.000000e+00> : vector<128x128xf32>
    %34 = tpu.matmul %33, %31, %cst_27 {dimension_numbers = #tpu.dot_dimension_numbers<[1], [0], [0], [1], [0, 0, 1, 1], [], []>} : vector<128x128xbf16>, vector<128x128xbf16>, vector<128x128xf32> -> vector<128x128xf32>
    %35 = arith.truncf %34 : vector<128x128xf32> to vector<128x128xbf16>
    %cst_28 = arith.constant dense<0.000000e+00> : vector<128x128xf32>
    %36 = tpu.matmul %0, %35, %cst_28 {dimension_numbers = #tpu.dot_dimension_numbers<[1], [0], [0], [1], [0, 0, 1, 1], [], []>} : vector<128x128xbf16>, vector<128x128xbf16>, vector<128x128xf32> -> vector<128x128xf32>
    %37 = vector.broadcast %32 : vector<1x128xf32> to vector<128x128xf32>
    %38 = arith.addf %36, %37 : vector<128x128xf32>
    %cst_29 = arith.constant 0.000000e+00 : f32
    %39 = vector.broadcast %cst_29 : f32 to vector<128x128xf32>
    %40 = arith.maximumf %38, %39 : vector<128x128xf32>
    %c0_30 = arith.constant 0 : index
    %c0_31 = arith.constant 0 : index
    %41 = vector.load %arg10[%c0_30, %c0_31] : memref<128x128xbf16, #tpu.memory_space<vmem>>, vector<128x128xbf16>
    %c0_32 = arith.constant 0 : index
    %c0_33 = arith.constant 0 : index
    %42 = vector.load %arg11[%c0_32, %c0_33] : memref<1x128xf32, #tpu.memory_space<vmem>>, vector<1x128xf32>
    %43 = arith.truncf %40 : vector<128x128xf32> to vector<128x128xbf16>
    %cst_34 = arith.constant dense<0.000000e+00> : vector<128x128xf32>
    %44 = tpu.matmul %43, %41, %cst_34 {dimension_numbers = #tpu.dot_dimension_numbers<[1], [0], [0], [1], [0, 0, 1, 1], [], []>} : vector<128x128xbf16>, vector<128x128xbf16>, vector<128x128xf32> -> vector<128x128xf32>
    %45 = arith.truncf %44 : vector<128x128xf32> to vector<128x128xbf16>
    %cst_35 = arith.constant dense<0.000000e+00> : vector<128x128xf32>
    %46 = tpu.matmul %0, %45, %cst_35 {dimension_numbers = #tpu.dot_dimension_numbers<[1], [0], [0], [1], [0, 0, 1, 1], [], []>} : vector<128x128xbf16>, vector<128x128xbf16>, vector<128x128xf32> -> vector<128x128xf32>
    %47 = vector.broadcast %42 : vector<1x128xf32> to vector<128x128xf32>
    %48 = arith.addf %46, %47 : vector<128x128xf32>
    %cst_36 = arith.constant 0.000000e+00 : f32
    %49 = vector.broadcast %cst_36 : f32 to vector<128x128xf32>
    %50 = arith.maximumf %48, %49 : vector<128x128xf32>
    %c0_37 = arith.constant 0 : index
    %c0_38 = arith.constant 0 : index
    %51 = vector.load %arg12[%c0_37, %c0_38] : memref<128x128xbf16, #tpu.memory_space<vmem>>, vector<128x128xbf16>
    %c0_39 = arith.constant 0 : index
    %c0_40 = arith.constant 0 : index
    %52 = vector.load %arg13[%c0_39, %c0_40] : memref<1x128xf32, #tpu.memory_space<vmem>>, vector<1x128xf32>
    %53 = arith.truncf %50 : vector<128x128xf32> to vector<128x128xbf16>
    %cst_41 = arith.constant dense<0.000000e+00> : vector<128x128xf32>
    %54 = tpu.matmul %53, %51, %cst_41 {dimension_numbers = #tpu.dot_dimension_numbers<[1], [0], [0], [1], [0, 0, 1, 1], [], []>} : vector<128x128xbf16>, vector<128x128xbf16>, vector<128x128xf32> -> vector<128x128xf32>
    %55 = arith.truncf %54 : vector<128x128xf32> to vector<128x128xbf16>
    %cst_42 = arith.constant dense<0.000000e+00> : vector<128x128xf32>
    %56 = tpu.matmul %0, %55, %cst_42 {dimension_numbers = #tpu.dot_dimension_numbers<[1], [0], [0], [1], [0, 0, 1, 1], [], []>} : vector<128x128xbf16>, vector<128x128xbf16>, vector<128x128xf32> -> vector<128x128xf32>
    %57 = vector.broadcast %52 : vector<1x128xf32> to vector<128x128xf32>
    %58 = arith.addf %56, %57 : vector<128x128xf32>
    %59 = tpu.iota {dimensions = array<i32: 1>} : vector<128x128xi32>
    %c8_i32 = arith.constant 8 : i32
    %60 = vector.broadcast %c8_i32 : i32 to vector<128x128xi32>
    %61 = arith.cmpi slt, %59, %60 : vector<128x128xi32>
    %cst_43 = arith.constant 0xFF800000 : f32
    %62 = vector.broadcast %cst_43 : f32 to vector<128x128xf32>
    %63 = arith.select %61, %58, %62 : vector<128x128xi1>, vector<128x128xf32>
    %cst_44 = arith.constant dense<0xFF800000> : vector<128xf32>
    %64 = vector.multi_reduction <maximumf>, %63, %cst_44 [1] : vector<128x128xf32> to vector<128xf32>
    %65 = vector.shape_cast %64 : vector<128xf32> to vector<128x1xf32>
    %66 = vector.broadcast %65 : vector<128x1xf32> to vector<128x128xf32>
    %67 = arith.subf %63, %66 : vector<128x128xf32>
    %68 = math.exp %67 : vector<128x128xf32>
    %cst_45 = arith.constant dense<0.000000e+00> : vector<128xf32>
    %69 = vector.multi_reduction <add>, %68, %cst_45 [1] : vector<128x128xf32> to vector<128xf32>
    %70 = vector.shape_cast %69 : vector<128xf32> to vector<128x1xf32>
    %71 = math.log %70 : vector<128x1xf32>
    %72 = vector.broadcast %71 : vector<128x1xf32> to vector<128x128xf32>
    %73 = arith.subf %67, %72 : vector<128x128xf32>
    %c0_46 = arith.constant 0 : index
    %c0_47 = arith.constant 0 : index
    %74 = vector.load %arg14[%c0_46, %c0_47] : memref<128x128xf32, #tpu.memory_space<vmem>>, vector<128x128xf32>
    tpu.vector_store %arg14[%c0_46, %c0_47], %73 {strides = array<i32>} : memref<128x128xf32, #tpu.memory_space<vmem>>, vector<128x128xf32>,
    return
  }
}

</mosaic_0001>

<bundles_post_ra>
// kernel: tpu_custom_call.1
= control target key start
LH: loop header
LB: loop body
LE: loop exit
PB: predicated region body
PF: predicated region fallthrough
CT: control target
= control target key end

     0   :  { %19 = vsyncpa [#allocation3], 0  ;;  %s3731_s0 = inlined_call_operand.hbm [shape: bf16[128,128], index: 0, kind: input, shape index: {}]   ;;  %s3732_s1 = inlined_call_operand.hbm [shape: bf16[128,128], index: 1, kind: input, shape index: {}]   ;;  %s3733_s2 = inlined_call_operand.hbm [shape: bf16[128,128], index: 2, kind: input, shape index: {}]   ;;  %s3734_s3 = inlined_call_operand.vmem [shape: f32[1,128], index: 3, kind: input, shape index: {}]   ;;  %s3735_s4 = inlined_call_operand.hbm [shape: bf16[128,128], index: 4, kind: input, shape index: {}]   ;;  %s3736_s5 = inlined_call_operand.vmem [shape: f32[1,128], index: 5, kind: input, shape index: {}]   ;;  %s3737_s6 = inlined_call_operand.hbm [shape: bf16[128,128], index: 6, kind: input, shape index: {}]   ;;  %s3738_s7 = inlined_call_operand.vmem [shape: f32[1,128], index: 7, kind: input, shape index: {}]   ;;  %s3739_s8 = inlined_call_operand.hbm [shape: bf16[128,128], index: 8, kind: input, shape index: {}]   ;;  %s3740_s9 = inlined_call_operand.vmem [shape: f32[1,128], index: 9, kind: input, shape index: {}]   ;;  %s3741_s10 = inlined_call_operand.hbm [shape: bf16[128,128], index: 10, kind: input, shape index: {}]   ;;  %s3742_s11 = inlined_call_operand.vmem [shape: f32[1,128], index: 11, kind: input, shape index: {}]   ;;  %s3743_s12 = inlined_call_operand.hbm [shape: bf16[128,128], index: 12, kind: input, shape index: {}]   ;;  %s3744_s13 = inlined_call_operand.vmem [shape: f32[1,128], index: 13, kind: input, shape index: {}]   ;;  %s3745_s14 = inlined_call_operand.hbm [shape: f32[128,128], index: 14, kind: output, shape index: {}]  }
   0x1   :  { %20 = vsyncpa [#allocation6], 0 }
   0x2   :  { %21 = vsyncpa [#allocation9], 0 }
   0x3   :  { %22 = vsyncpa [#allocation12], 0 }
   0x4   :  { %23 = vsyncpa [#allocation15], 0 }
   0x5   :  { %24 = vsyncpa [#allocation4], 0  ;;  %s3265_s29 = smov [#allocation5]   ;;  %s3266_s15 = smov [#allocation8]  }
   0x6   :  { %s42_s30 = sshll.u32 %s3265_s29, 4  ;;  %s68_s16 = sshll.u32 %s3266_s15, 4  ;;  %s43_s30 = int_to_ptr.vmem [resolvable:$true] %s42_s30  ;;  %s3353_s16 = int_to_ptr.vmem [resolvable:$true] %s68_s16 }
   0x7   :  { %s3055_s19 = scalar_lea.hbm %s3732_s1, 1024 }
   0x8   :  { %p3056_p0 = scmp.ne.s32.totalorder %s3732_s1, %s3055_s19  ;;  %p3059_p1 = scmp.lt.u32.totalorder %s3055_s19, %s3732_s1 }
   0xa   :  { %p3061_p2 = pnand %p3059_p1, %p3056_p0 }
   0xc   :  { %3064 = shalt.err (!%p3061_p2)
}
   0xd   :  { %s3065_s24 = scalar_lea.vmem %s43_s30, 1024  ;;  %p3070_p4 = scmp.lt.s32.totalorder %s43_s30, %s43_s30 }
   0xe   :  { %p3066_p3 = scmp.ne.s32.totalorder %s43_s30, %s3065_s24  ;;  %p3071_p5 = scmp.lt.s32.totalorder %s3065_s24, %s3065_s24 }
  0x10   :  { %p3072_p6 = por %p3071_p5, %p3070_p4 }
  0x12   :  { %p3073_p7 = pnand %p3072_p6, %p3066_p3 }
  0x14   :  { %3076 = shalt.err (!%p3073_p7)
}
  0x15   :  { %s3267_s25 = smov 64   ;;  %s3268_s26 = smov 4  }
  0x16   :  { %48 = dma.hbm_to_vmem [thread:$0]  %s3732_s1, 1024, %s43_s30, [#allocation6], %s3267_s25, %s3267_s25, %s3268_s26  }
  0x17   :  { %s3077_s17 = scalar_lea.hbm %s3735_s4, 1024 }
  0x18   :  { %p3078_p8 = scmp.ne.s32.totalorder %s3735_s4, %s3077_s17  ;;  %p3081_p9 = scmp.lt.u32.totalorder %s3077_s17, %s3735_s4 }
  0x1a   :  { %p3083_p10 = pnand %p3081_p9, %p3078_p8 }
  0x1c   :  { %3086 = shalt.err (!%p3083_p10)
}
  0x1d   :  { %s3087_s22 = scalar_lea.vmem %s3353_s16, 1024  ;;  %p3092_p12 = scmp.lt.s32.totalorder %s3353_s16, %s3353_s16 }
  0x1e   :  { %p3088_p11 = scmp.ne.s32.totalorder %s3353_s16, %s3087_s22  ;;  %p3093_p13 = scmp.lt.s32.totalorder %s3087_s22, %s3087_s22 }
  0x20   :  { %p3094_p0 = por %p3093_p13, %p3092_p12 }
  0x22   :  { %p3095_p1 = pnand %p3094_p0, %p3088_p11 }
  0x24   :  { %3098 = shalt.err (!%p3095_p1)
}
  0x25   :  { %74 = dma.hbm_to_vmem [thread:$0]  %s3735_s4, 1024, %s3353_s16, [#allocation9], %s3267_s25, %s3267_s25, %s3268_s26  }
  0x26   :  { %s3269_s23 = smov [#allocation11]   ;;  %s3270_s27 = smov [#allocation2]  }
  0x27   :  { %s96_s24 = sshll.u32 %s3269_s23, 4  ;;  %s30_s28 = sshll.u32 %s3270_s27, 4  ;;  %s97_s24 = int_to_ptr.vmem [resolvable:$true] %s96_s24  ;;  %s3390_s28 = int_to_ptr.vmem [resolvable:$true] %s30_s28 }
  0x28   :  { %s3099_s17 = scalar_lea.hbm %s3739_s8, 1024 }
  0x29   :  { %p3100_p2 = scmp.ne.s32.totalorder %s3739_s8, %s3099_s17  ;;  %p3103_p3 = scmp.lt.u32.totalorder %s3099_s17, %s3739_s8 }
  0x2b   :  { %p3105_p4 = pnand %p3103_p3, %p3100_p2 }
  0x2d   :  { %3108 = shalt.err (!%p3105_p4)
}
  0x2e   :  { %s3109_s4 = scalar_lea.vmem %s97_s24, 1024  ;;  %p3114_p6 = scmp.lt.s32.totalorder %s97_s24, %s97_s24 }
  0x2f   :  { %p3110_p5 = scmp.ne.s32.totalorder %s97_s24, %s3109_s4  ;;  %p3115_p7 = scmp.lt.s32.totalorder %s3109_s4, %s3109_s4 }
  0x31   :  { %p3116_p8 = por %p3115_p7, %p3114_p6 }
  0x33   :  { %p3117_p9 = pnand %p3116_p8, %p3110_p5 }
  0x35   :  { %3120 = shalt.err (!%p3117_p9)
}
  0x36   :  { %102 = dma.hbm_to_vmem [thread:$0]  %s3739_s8, 1024, %s97_s24, [#allocation12], %s3267_s25, %s3267_s25, %s3268_s26  }
  0x37   :  { %s3121_s23 = scalar_lea.hbm %s3731_s0, 1024 }
  0x38   :  { %p3122_p10 = scmp.ne.s32.totalorder %s3731_s0, %s3121_s23  ;;  %p3125_p11 = scmp.lt.u32.totalorder %s3121_s23, %s3731_s0 }
  0x3a   :  { %p3127_p12 = pnand %p3125_p11, %p3122_p10 }
  0x3c   :  { %3130 = shalt.err (!%p3127_p12)
}
  0x3d   :  { %s3131_s18 = scalar_lea.vmem %s3390_s28, 1024  ;;  %p3136_p0 = scmp.lt.s32.totalorder %s3390_s28, %s3390_s28 }
  0x3e   :  { %p3132_p13 = scmp.ne.s32.totalorder %s3390_s28, %s3131_s18  ;;  %p3137_p1 = scmp.lt.s32.totalorder %s3131_s18, %s3131_s18 }
  0x40   :  { %p3138_p2 = por %p3137_p1, %p3136_p0 }
  0x42   :  { %p3139_p3 = pnand %p3138_p2, %p3132_p13 }
  0x44   :  { %3142 = shalt.err (!%p3139_p3)
}
  0x45   :  { %36 = dma.hbm_to_vmem [thread:$0]  %s3731_s0, 1024, %s3390_s28, [#allocation3], %s3267_s25, %s3267_s25, %s3268_s26  }
  0x46   :  { %s3271_s19 = smov [#allocation7]   ;;  %s3272_s21 = smov [#allocation10]  }
  0x47   :  { %s54_s20 = sshll.u32 %s3271_s19, 4  ;;  %s82_s4 = sshll.u32 %s3272_s21, 4  ;;  %s55_s20 = int_to_ptr.vmem [resolvable:$true] %s54_s20  ;;  %s3427_s4 = int_to_ptr.vmem [resolvable:$true] %s82_s4 }
  0x48   :  { %s3143_s1 = scalar_lea.hbm %s3733_s2, 1024 }
  0x49   :  { %p3144_p4 = scmp.ne.s32.totalorder %s3733_s2, %s3143_s1  ;;  %p3147_p5 = scmp.lt.u32.totalorder %s3143_s1, %s3733_s2 }
  0x4b   :  { %p3149_p6 = pnand %p3147_p5, %p3144_p4 }
  0x4d   :  { %3152 = shalt.err (!%p3149_p6)
}
  0x4e   :  { %s3153_s0 = scalar_lea.vmem %s55_s20, 1024  ;;  %p3158_p8 = scmp.lt.s32.totalorder %s55_s20, %s55_s20 }
  0x4f   :  { %p3154_p7 = scmp.ne.s32.totalorder %s55_s20, %s3153_s0  ;;  %p3159_p9 = scmp.lt.s32.totalorder %s3153_s0, %s3153_s0 }
  0x51   :  { %p3160_p10 = por %p3159_p9, %p3158_p8 }
  0x53   :  { %p3161_p11 = pnand %p3160_p10, %p3154_p7 }
  0x55   :  { %3164 = shalt.err (!%p3161_p11)
}
  0x56   :  { %60 = dma.hbm_to_vmem [thread:$0]  %s3733_s2, 1024, %s55_s20, [#allocation6], %s3267_s25, %s3267_s25, %s3268_s26  }
  0x57   :  { %s3165_s8 = scalar_lea.hbm %s3737_s6, 1024 }
  0x58   :  { %p3166_p12 = scmp.ne.s32.totalorder %s3737_s6, %s3165_s8  ;;  %p3169_p13 = scmp.lt.u32.totalorder %s3165_s8, %s3737_s6 }
  0x5a   :  { %p3171_p0 = pnand %p3169_p13, %p3166_p12 }
  0x5c   :  { %3174 = shalt.err (!%p3171_p0)
}
  0x5d   :  { %s3175_s22 = scalar_lea.vmem %s3427_s4, 1024  ;;  %p3180_p2 = scmp.lt.s32.totalorder %s3427_s4, %s3427_s4 }
  0x5e   :  { %p3176_p1 = scmp.ne.s32.totalorder %s3427_s4, %s3175_s22  ;;  %p3181_p3 = scmp.lt.s32.totalorder %s3175_s22, %s3175_s22 }
  0x60   :  { %p3182_p4 = por %p3181_p3, %p3180_p2 }
  0x62   :  { %p3183_p5 = pnand %p3182_p4, %p3176_p1 }
  0x64   :  { %3186 = shalt.err (!%p3183_p5)
}
  0x65   :  { %88 = dma.hbm_to_vmem [thread:$0]  %s3737_s6, 1024, %s3427_s4, [#allocation9], %s3267_s25, %s3267_s25, %s3268_s26  }
  0x66   :  { %s3273_s1 = smov [#allocation13]   ;;  %s3274_s23 = smov [#allocation14]  }
  0x67   :  { %s110_s30 = sshll.u32 %s3273_s1, 4  ;;  %s124_s27 = sshll.u32 %s3274_s23, 4  ;;  %s111_s30 = int_to_ptr.vmem [resolvable:$true] %s110_s30  ;;  %s3464_s27 = int_to_ptr.vmem [resolvable:$true] %s124_s27 }
  0x68   :  { %s3187_s28 = scalar_lea.hbm %s3741_s10, 1024 }
  0x69   :  { %p3188_p6 = scmp.ne.s32.totalorder %s3741_s10, %s3187_s28  ;;  %p3191_p7 = scmp.lt.u32.totalorder %s3187_s28, %s3741_s10 }
  0x6b   :  { %p3193_p8 = pnand %p3191_p7, %p3188_p6 }
  0x6d   :  { %3196 = shalt.err (!%p3193_p8)
}
  0x6e   :  { %s3197_s6 = scalar_lea.vmem %s111_s30, 1024  ;;  %p3202_p10 = scmp.lt.s32.totalorder %s111_s30, %s111_s30 }
  0x6f   :  { %p3198_p9 = scmp.ne.s32.totalorder %s111_s30, %s3197_s6  ;;  %p3203_p11 = scmp.lt.s32.totalorder %s3197_s6, %s3197_s6 }
  0x71   :  { %p3204_p12 = por %p3203_p11, %p3202_p10 }
  0x73   :  { %p3205_p13 = pnand %p3204_p12, %p3198_p9 }
  0x75   :  { %3208 = shalt.err (!%p3205_p13)
}
  0x76   :  { %116 = dma.hbm_to_vmem [thread:$0]  %s3741_s10, 1024, %s111_s30, [#allocation12], %s3267_s25, %s3267_s25, %s3268_s26  }
  0x77   :  { %s3209_s16 = scalar_lea.hbm %s3743_s12, 1024 }
  0x78   :  { %p3210_p0 = scmp.ne.s32.totalorder %s3743_s12, %s3209_s16  ;;  %p3213_p1 = scmp.lt.u32.totalorder %s3209_s16, %s3743_s12 }
  0x7a   :  { %p3215_p2 = pnand %p3213_p1, %p3210_p0 }
  0x7c   :  { %3218 = shalt.err (!%p3215_p2)
}
  0x7d   :  { %s3219_s23 = scalar_lea.vmem %s3464_s27, 1024  ;;  %p3224_p4 = scmp.lt.s32.totalorder %s3464_s27, %s3464_s27 }
  0x7e   :  { %p3220_p3 = scmp.ne.s32.totalorder %s3464_s27, %s3219_s23  ;;  %p3225_p5 = scmp.lt.s32.totalorder %s3219_s23, %s3219_s23 }
  0x80   :  { %p3226_p6 = por %p3225_p5, %p3224_p4 }
  0x82   :  { %p3227_p7 = pnand %p3226_p6, %p3220_p3 }
  0x84   :  { %3230 = shalt.err (!%p3227_p7)
}
  0x85   :  { %130 = dma.hbm_to_vmem [thread:$0]  %s3743_s12, 1024, %s3464_s27, [#allocation15], %s3267_s25, %s3267_s25, %s3268_s26  }
  0x86   :  { %3253 = dma.done.wait [#allocation3], 1024  }
  0x87   :  { %3254 = vsyncadd [#allocation3], 4294966272 }
  0x88   :  { %3255 = dma.done.wait [#allocation6], 2048  }
  0x89   :  { %3256 = vsyncadd [#allocation6], 4294965248 }
  0x8a   :  { %3257 = dma.done.wait [#allocation9], 2048  }
  0x8b   :  { %3258 = vsyncadd [#allocation9], 4294965248 }
  0x8c   :  { %3259 = dma.done.wait [#allocation12], 2048  }
  0x8d   :  { %3260 = vsyncadd [#allocation12], 4294965248 }
  0x8e   :  { %3261 = dma.done.wait [#allocation15], 1024  }
  0x8f   :  { %3262 = vsyncadd [#allocation15], 4294966272  ;;  %v2919_v0 = vld [vmem:[#allocation7] sm:$0xff]   ;;  %v2920_v1 = vld [vmem:[#allocation7 + $0x8] sm:$0xff]  }
  0x90   :  { %2522 = vmatprep.subr.bf16.mxu0 %v2919_v0  ;;  %v2921_v2 = vld [vmem:[#allocation7 + $0x10] sm:$0xff]   ;;  %v2922_v3 = vld [vmem:[#allocation7 + $0x18] sm:$0xff]   ;;  %v2927_v4 = vld [vmem:[#allocation5] sm:$0xff]  }
  0x91   :  { %2523 = vmatpush3.bf16.msra.mxu0 %v2919_v0  ;;  %2538 = vmatprep.mubr.bf16.mxu0 %v2927_v4  ;;  %v2923_v5 = vld [vmem:[#allocation7 + $0x20] sm:$0xff]   ;;  %v2924_v6 = vld [vmem:[#allocation7 + $0x28] sm:$0xff]   ;;  %v2925_v7 = vld [vmem:[#allocation7 + $0x30] sm:$0xff]  }
  0x92   :  { %2524 = vmatprep.subr.bf16.mxu0 %v2920_v1  ;;  %v2926_v8 = vld [vmem:[#allocation7 + $0x38] sm:$0xff]   ;;  %v2928_v9 = vld [vmem:[#allocation5 + $0x8] sm:$0xff]   ;;  %v2929_v10 = vld [vmem:[#allocation5 + $0x10] sm:$0xff]  }
  0x93   :  { %v2930_v11 = vld [vmem:[#allocation5 + $0x18] sm:$0xff]   ;;  %v2931_v12 = vld [vmem:[#allocation5 + $0x20] sm:$0xff]   ;;  %v2932_v13 = vld [vmem:[#allocation5 + $0x28] sm:$0xff]  }
  0x94   :  { %v2933_v14 = vld [vmem:[#allocation5 + $0x30] sm:$0xff]   ;;  %v2934_v15 = vld [vmem:[#allocation5 + $0x38] sm:$0xff]   ;;  %v3501_v16 = vld [vmem:[#allocation2] sm:$0xff]  }
  0x95   :  { %2525 = vmatpush3.bf16.msra.mxu0 %v2920_v1  ;;  %2570 = vmatprep.mubr.bf16.mxu1 %v3501_v16  ;;  %v2943_v17 = vld [vmem:[#allocation8] sm:$0xff]   ;;  %v2944_v18 = vld [vmem:[#allocation8 + $0x8] sm:$0xff]   ;;  %v2945_v19 = vld [vmem:[#allocation8 + $0x10] sm:$0xff]  }
  0x96   :  { %2526 = vmatprep.subr.bf16.mxu0 %v2921_v2  ;;  %v2946_v20 = vld [vmem:[#allocation8 + $0x18] sm:$0xff]   ;;  %v2947_v21 = vld [vmem:[#allocation8 + $0x20] sm:$0xff]   ;;  %v2948_v22 = vld [vmem:[#allocation8 + $0x28] sm:$0xff]  }
  0x97   :  { %v3504_v47 = vld [vmem:[#allocation2 + $0x8] sm:$0xff]   ;;  %v3506_v48 = vld [vmem:[#allocation2 + $0x10] sm:$0xff]   ;;  %v3510_v49 = vld [vmem:[#allocation2 + $0x18] sm:$0xff]  }
  0x98   :  { %v3512_v50 = vld [vmem:[#allocation2 + $0x20] sm:$0xff]   ;;  %v3516_v51 = vld [vmem:[#allocation2 + $0x28] sm:$0xff]   ;;  %v3518_v52 = vld [vmem:[#allocation2 + $0x30] sm:$0xff]  }
  0x99   :  { %2527 = vmatpush3.bf16.msra.mxu0 %v2921_v2  ;;  %v3522_v53 = vld [vmem:[#allocation2 + $0x38] sm:$0xff]   ;;  %v2949_v54 = vld [vmem:[#allocation8 + $0x30] sm:$0xff]   ;;  %v2276_v56 = vld [vmem:[%s3734_s3] ss:$0 sm:$0xff] }
  0x9a   :  { %2528 = vmatprep.subr.bf16.mxu0 %v2922_v3  ;;  %v2950_v55 = vld [vmem:[#allocation8 + $0x38] sm:$0xff]  }
  0x9d   :  { %2529 = vmatpush3.bf16.msra.mxu0 %v2922_v3 }
  0x9e   :  { %2530 = vmatprep.subr.bf16.mxu0 %v2923_v5 }
  0xa1   :  { %2531 = vmatpush3.bf16.msra.mxu0 %v2923_v5 }
  0xa2   :  { %2532 = vmatprep.subr.bf16.mxu0 %v2924_v6 }
  0xa5   :  { %2533 = vmatpush3.bf16.msra.mxu0 %v2924_v6 }
  0xa6   :  { %2534 = vmatprep.subr.bf16.mxu0 %v2925_v7 }
  0xa9   :  { %2535 = vmatpush3.bf16.msra.mxu0 %v2925_v7 }
  0xaa   :  { %2536 = vmatprep.subr.bf16.mxu0 %v2926_v8 }
  0xad   :  { %2537 = vmatpush3.bf16.msra.mxu0 %v2926_v8 }
  0xae   :  { %2586 = vmatprep.subr.bf16.mxu0 %v2943_v17 }
  0xb0   :  { %2539 = vmatmul.mubr.bf16.vlgmr.msra.gmra.mrb[0].mxu0 %v2928_v9 }
  0xb1   :  { %2542 = vmatprep.mubr.bf16.mxu0 %v2929_v10  ;;  %2587 = vmatpush3.bf16.msra.mxu0 %v2943_v17 }
  0xb2   :  { %2588 = vmatprep.subr.bf16.mxu0 %v2944_v18 }
  0xb5   :  { %2589 = vmatpush3.bf16.msra.mxu0 %v2944_v18 }
  0xb6   :  { %2590 = vmatprep.subr.bf16.mxu0 %v2945_v19 }
  0xb8   :  { %2543 = vmatmul.mubr.bf16.gmra.mrb[4].mxu0 %v2930_v11 }
  0xb9   :  { %2546 = vmatprep.mubr.bf16.mxu0 %v2931_v12  ;;  %2591 = vmatpush3.bf16.msra.mxu0 %v2945_v19 }
  0xba   :  { %2592 = vmatprep.subr.bf16.mxu0 %v2946_v20 }
  0xbd   :  { %2593 = vmatpush3.bf16.msra.mxu0 %v2946_v20 }
  0xbe   :  { %2594 = vmatprep.subr.bf16.mxu0 %v2947_v21 }
  0xc0   :  { %2547 = vmatmul.mubr.bf16.gmra.mrb[8].mxu0 %v2932_v13 }
  0xc1   :  { %2550 = vmatprep.mubr.bf16.mxu0 %v2933_v14  ;;  %2595 = vmatpush3.bf16.msra.mxu0 %v2947_v21 }
  0xc2   :  { %2596 = vmatprep.subr.bf16.mxu0 %v2948_v22 }
  0xc5   :  { %2597 = vmatpush3.bf16.msra.mxu0 %v2948_v22 }
  0xc6   :  { %2598 = vmatprep.subr.bf16.mxu0 %v2949_v54 }
  0xc8   :  { %2551 = vmatmul.mubr.bf16.gmra.mrb[12].mxu0 %v2934_v15 }
  0xc9   :  { %2599 = vmatpush3.bf16.msra.mxu0 %v2949_v54 }
  0xca   :  { %2600 = vmatprep.subr.bf16.mxu0 %v2950_v55 }
  0xcd   :  { %2601 = vmatpush3.bf16.msra.mxu0 %v2950_v55 }
 0x183   :  { %v2540_v23 = vpop.f32.mrb[0].mxu0 }
 0x184   :  { %v337_v24 = vpop.f32.mrb[1].mxu0 }
 0x185   :  { %v2541_v25 = vpop.f32.mrb[2].mxu0 }
 0x186   :  { %v401_v26 = vpack.c.bf16 %v2541_v25, %v2540_v23  ;;  %v340_v27 = vpop.f32.mrb[3].mxu0 }
 0x187   :  { %v400_v28 = vpack.c.bf16 %v340_v27, %v337_v24 }
 0x189   :  { %2554 = vmatprep.subr.bf16.mxu1 %v400_v28 }
 0x18a   :  { %2555 = vmatpush3.bf16.msra.mxu1 %v400_v28 }
 0x18b   :  { %v2544_v29 = vpop.f32.mrb[4].mxu0  ;;  %2556 = vmatprep.subr.bf16.mxu1 %v401_v26 }
 0x18c   :  { %v353_v30 = vpop.f32.mrb[5].mxu0 }
 0x18d   :  { %v2545_v31 = vpop.f32.mrb[6].mxu0 }
 0x18e   :  { %v403_v32 = vpack.c.bf16 %v2545_v31, %v2544_v29  ;;  %v356_v33 = vpop.f32.mrb[7].mxu0  ;;  %2557 = vmatpush3.bf16.msra.mxu1 %v401_v26 }
 0x18f   :  { %v402_v34 = vpack.c.bf16 %v356_v33, %v353_v30 }
 0x191   :  { %2558 = vmatprep.subr.bf16.mxu1 %v402_v34 }
 0x192   :  { %2559 = vmatpush3.bf16.msra.mxu1 %v402_v34 }
 0x193   :  { %v2548_v35 = vpop.f32.mrb[8].mxu0  ;;  %2560 = vmatprep.subr.bf16.mxu1 %v403_v32 }
 0x194   :  { %v369_v36 = vpop.f32.mrb[9].mxu0 }
 0x195   :  { %v2549_v37 = vpop.f32.mrb[10].mxu0 }
 0x196   :  { %v405_v38 = vpack.c.bf16 %v2549_v37, %v2548_v35  ;;  %v372_v39 = vpop.f32.mrb[11].mxu0  ;;  %2561 = vmatpush3.bf16.msra.mxu1 %v403_v32 }
 0x197   :  { %v404_v40 = vpack.c.bf16 %v372_v39, %v369_v36 }
 0x199   :  { %2562 = vmatprep.subr.bf16.mxu1 %v404_v40 }
 0x19a   :  { %2563 = vmatpush3.bf16.msra.mxu1 %v404_v40 }
 0x19b   :  { %v2552_v41 = vpop.f32.mrb[12].mxu0  ;;  %2564 = vmatprep.subr.bf16.mxu1 %v405_v38 }
 0x19c   :  { %v385_v42 = vpop.f32.mrb[13].mxu0 }
 0x19d   :  { %v2553_v43 = vpop.f32.mrb[14].mxu0 }
 0x19e   :  { %v407_v44 = vpack.c.bf16 %v2553_v43, %v2552_v41  ;;  %v388_v45 = vpop.f32.mrb[15].mxu0  ;;  %2565 = vmatpush3.bf16.msra.mxu1 %v405_v38 }
 0x19f   :  { %v406_v46 = vpack.c.bf16 %v388_v45, %v385_v42 }
 0x1a1   :  { %2566 = vmatprep.subr.bf16.mxu1 %v406_v46 }
 0x1a2   :  { %2567 = vmatpush3.bf16.msra.mxu1 %v406_v46 }
 0x1a3   :  { %2568 = vmatprep.subr.bf16.mxu1 %v407_v44 }
 0x1a6   :  { %2569 = vmatpush3.bf16.msra.mxu1 %v407_v44 }
 0x1a9   :  { %2571 = vmatmul.mubr.bf16.vlgmr.msra.gmra.mrb[0].mxu1 %v3504_v47 }
 0x1aa   :  { %2574 = vmatprep.mubr.bf16.mxu1 %v3506_v48 }
 0x1b1   :  { %2575 = vmatmul.mubr.bf16.gmra.mrb[4].mxu1 %v3510_v49 }
 0x1b2   :  { %2578 = vmatprep.mubr.bf16.mxu1 %v3512_v50 }
 0x1b9   :  { %2579 = vmatmul.mubr.bf16.gmra.mrb[8].mxu1 %v3516_v51 }
 0x1ba   :  { %2582 = vmatprep.mubr.bf16.mxu1 %v3518_v52 }
 0x1c1   :  { %2583 = vmatmul.mubr.bf16.gmra.mrb[12].mxu1 %v3522_v53 }
 0x1c2   :  { %2634 = vmatprep.mubr.bf16.mxu1 %v3501_v16 }
 0x27c   :  { %v2572_v57 = vpop.f32.mrb[0].mxu1 }
 0x27d   :  { %v505_v58 = vadd.f32 %v2572_v57, %v2276_v56  ;;  %v496_v59 = vpop.f32.mrb[1].mxu1 }
 0x27e   :  { %v497_v60 = vadd.f32 %v2276_v56, %v496_v59  ;;  %v2573_v61 = vpop.f32.mrb[2].mxu1  ;;  %v2952_v59 = vld [vmem:[#allocation10 + $0x8] sm:$0xff]  }
 0x27f   :  { %v508_v62 = vadd.f32 %v2573_v61, %v2276_v56  ;;  %v499_v63 = vpop.f32.mrb[3].mxu1  ;;  %v561_v1 = vmax.f32 %v505_v58, 0.0  ;;  %v2951_v58 = vld [vmem:[#allocation10] sm:$0xff]   ;;  %v2954_v61 = vld [vmem:[#allocation10 + $0x18] sm:$0xff]  }
 0x280   :  { %v500_v0 = vadd.f32 %v2276_v56, %v499_v63  ;;  %v559_v3 = vmax.f32 %v497_v60, 0.0  ;;  %2650 = vmatprep.subr.bf16.mxu0 %v2951_v58  ;;  %v2953_v60 = vld [vmem:[#allocation10 + $0x10] sm:$0xff]  }
 0x281   :  { %v562_v2 = vmax.f32 %v508_v62, 0.0  ;;  %v2956_v62 = vld [vmem:[#allocation10 + $0x28] sm:$0xff]  }
 0x282   :  { %v560_v4 = vmax.f32 %v500_v0, 0.0 }
 0x283   :  { %v593_v5 = vpack.c.bf16 %v562_v2, %v561_v1 }
 0x284   :  { %v592_v6 = vpack.c.bf16 %v560_v4, %v559_v3  ;;  %v2576_v7 = vpop.f32.mrb[4].mxu1 }
 0x285   :  { %v521_v8 = vadd.f32 %v2576_v7, %v2276_v56  ;;  %v512_v9 = vpop.f32.mrb[5].mxu1 }
 0x286   :  { %v513_v10 = vadd.f32 %v2276_v56, %v512_v9  ;;  %v2577_v11 = vpop.f32.mrb[6].mxu1  ;;  %2602 = vmatprep.mubr.bf16.mxu0 %v592_v6 }
 0x287   :  { %v524_v12 = vadd.f32 %v2577_v11, %v2276_v56  ;;  %v515_v13 = vpop.f32.mrb[7].mxu1  ;;  %2603 = vmatmul.mubr.bf16.vlgmr.msra.gmra.mrb[16].mxu0 %v593_v5  ;;  %v565_v15 = vmax.f32 %v521_v8, 0.0 }
 0x288   :  { %v516_v14 = vadd.f32 %v2276_v56, %v515_v13  ;;  %v563_v18 = vmax.f32 %v513_v10, 0.0  ;;  %2651 = vmatpush3.bf16.msra.mxu0 %v2951_v58 }
 0x289   :  { %v566_v17 = vmax.f32 %v524_v12, 0.0  ;;  %2652 = vmatprep.subr.bf16.mxu0 %v2952_v59 }
 0x28a   :  { %v564_v19 = vmax.f32 %v516_v14, 0.0 }
 0x28b   :  { %v595_v20 = vpack.c.bf16 %v566_v17, %v565_v15 }
 0x28c   :  { %v594_v21 = vpack.c.bf16 %v564_v19, %v563_v18  ;;  %v2580_v22 = vpop.f32.mrb[8].mxu1  ;;  %2653 = vmatpush3.bf16.msra.mxu0 %v2952_v59 }
 0x28d   :  { %v537_v23 = vadd.f32 %v2580_v22, %v2276_v56  ;;  %v528_v24 = vpop.f32.mrb[9].mxu1  ;;  %2654 = vmatprep.subr.bf16.mxu0 %v2953_v60 }
 0x28e   :  { %v529_v25 = vadd.f32 %v2276_v56, %v528_v24  ;;  %v2581_v26 = vpop.f32.mrb[10].mxu1  ;;  %2606 = vmatprep.mubr.bf16.mxu0 %v594_v21  ;;  %v2957_v24 = vld [vmem:[#allocation10 + $0x30] sm:$0xff]  }
 0x28f   :  { %v540_v27 = vadd.f32 %v2581_v26, %v2276_v56  ;;  %v531_v28 = vpop.f32.mrb[11].mxu1  ;;  %2607 = vmatmul.mubr.bf16.gmra.mrb[20].mxu0 %v595_v20  ;;  %v569_v30 = vmax.f32 %v537_v23, 0.0  ;;  %v2293_v26 = vld [vmem:[%s3736_s5] ss:$0 sm:$0xff] }
 0x290   :  { %v532_v29 = vadd.f32 %v2276_v56, %v531_v28  ;;  %v567_v32 = vmax.f32 %v529_v25, 0.0  ;;  %2655 = vmatpush3.bf16.msra.mxu0 %v2953_v60  ;;  %v2958_v25 = vld [vmem:[#allocation10 + $0x38] sm:$0xff]  }
 0x291   :  { %v570_v31 = vmax.f32 %v540_v27, 0.0  ;;  %2656 = vmatprep.subr.bf16.mxu0 %v2954_v61 }
 0x292   :  { %v568_v33 = vmax.f32 %v532_v29, 0.0 }
 0x293   :  { %v597_v34 = vpack.c.bf16 %v570_v31, %v569_v30 }
 0x294   :  { %v596_v35 = vpack.c.bf16 %v568_v33, %v567_v32  ;;  %v2584_v36 = vpop.f32.mrb[12].mxu1  ;;  %2657 = vmatpush3.bf16.msra.mxu0 %v2954_v61 }
 0x295   :  { %v553_v37 = vadd.f32 %v2584_v36, %v2276_v56  ;;  %v544_v38 = vpop.f32.mrb[13].mxu1 }
 0x296   :  { %v545_v39 = vadd.f32 %v2276_v56, %v544_v38  ;;  %v2585_v40 = vpop.f32.mrb[14].mxu1  ;;  %2610 = vmatprep.mubr.bf16.mxu0 %v596_v35 }
 0x297   :  { %v556_v41 = vadd.f32 %v2585_v40, %v2276_v56  ;;  %v547_v42 = vpop.f32.mrb[15].mxu1  ;;  %2611 = vmatmul.mubr.bf16.gmra.mrb[24].mxu0 %v597_v34  ;;  %v573_v44 = vmax.f32 %v553_v37, 0.0 }
 0x298   :  { %v548_v43 = vadd.f32 %v2276_v56, %v547_v42  ;;  %v571_v46 = vmax.f32 %v545_v39, 0.0  ;;  %v2955_v56 = vld [vmem:[#allocation10 + $0x20] sm:$0xff]  }
 0x299   :  { %v574_v45 = vmax.f32 %v556_v41, 0.0  ;;  %2658 = vmatprep.subr.bf16.mxu0 %v2955_v56 }
 0x29a   :  { %v572_v54 = vmax.f32 %v548_v43, 0.0  ;;  %2659 = vmatpush3.bf16.msra.mxu0 %v2955_v56 }
 0x29b   :  { %v599_v55 = vpack.c.bf16 %v574_v45, %v573_v44  ;;  %2660 = vmatprep.subr.bf16.mxu0 %v2956_v62 }
 0x29c   :  { %v598_v57 = vpack.c.bf16 %v572_v54, %v571_v46 }
 0x29e   :  { %2614 = vmatprep.mubr.bf16.mxu0 %v598_v57  ;;  %2661 = vmatpush3.bf16.msra.mxu0 %v2956_v62 }
 0x29f   :  { %2615 = vmatmul.mubr.bf16.gmra.mrb[28].mxu0 %v599_v55  ;;  %2662 = vmatprep.subr.bf16.mxu0 %v2957_v24 }
 0x2a2   :  { %2663 = vmatpush3.bf16.msra.mxu0 %v2957_v24 }
 0x2a3   :  { %2664 = vmatprep.subr.bf16.mxu0 %v2958_v25 }
 0x2a6   :  { %2665 = vmatpush3.bf16.msra.mxu0 %v2958_v25 }
 0x35a   :  { %v2604_v63 = vpop.f32.mrb[16].mxu0 }
 0x35b   :  { %v682_v0 = vpop.f32.mrb[17].mxu0 }
 0x35c   :  { %v2605_v1 = vpop.f32.mrb[18].mxu0 }
 0x35d   :  { %v746_v2 = vpack.c.bf16 %v2605_v1, %v2604_v63  ;;  %v685_v3 = vpop.f32.mrb[19].mxu0 }
 0x35e   :  { %v745_v4 = vpack.c.bf16 %v685_v3, %v682_v0 }
 0x360   :  { %2618 = vmatprep.subr.bf16.mxu1 %v745_v4 }
 0x361   :  { %2619 = vmatpush3.bf16.msra.mxu1 %v745_v4 }
 0x362   :  { %v2608_v5 = vpop.f32.mrb[20].mxu0  ;;  %2620 = vmatprep.subr.bf16.mxu1 %v746_v2 }
 0x363   :  { %v698_v6 = vpop.f32.mrb[21].mxu0 }
 0x364   :  { %v2609_v7 = vpop.f32.mrb[22].mxu0 }
 0x365   :  { %v748_v8 = vpack.c.bf16 %v2609_v7, %v2608_v5  ;;  %v701_v9 = vpop.f32.mrb[23].mxu0  ;;  %2621 = vmatpush3.bf16.msra.mxu1 %v746_v2 }
 0x366   :  { %v747_v10 = vpack.c.bf16 %v701_v9, %v698_v6 }
 0x368   :  { %2622 = vmatprep.subr.bf16.mxu1 %v747_v10 }
 0x369   :  { %2623 = vmatpush3.bf16.msra.mxu1 %v747_v10 }
 0x36a   :  { %v2612_v11 = vpop.f32.mrb[24].mxu0  ;;  %2624 = vmatprep.subr.bf16.mxu1 %v748_v8 }
 0x36b   :  { %v714_v12 = vpop.f32.mrb[25].mxu0 }
 0x36c   :  { %v2613_v13 = vpop.f32.mrb[26].mxu0 }
 0x36d   :  { %v750_v14 = vpack.c.bf16 %v2613_v13, %v2612_v11  ;;  %v717_v15 = vpop.f32.mrb[27].mxu0  ;;  %2625 = vmatpush3.bf16.msra.mxu1 %v748_v8 }
 0x36e   :  { %v749_v17 = vpack.c.bf16 %v717_v15, %v714_v12 }
 0x370   :  { %2626 = vmatprep.subr.bf16.mxu1 %v749_v17 }
 0x371   :  { %2627 = vmatpush3.bf16.msra.mxu1 %v749_v17 }
 0x372   :  { %v2616_v18 = vpop.f32.mrb[28].mxu0  ;;  %2628 = vmatprep.subr.bf16.mxu1 %v750_v14 }
 0x373   :  { %v730_v19 = vpop.f32.mrb[29].mxu0 }
 0x374   :  { %v2617_v20 = vpop.f32.mrb[30].mxu0 }
 0x375   :  { %v752_v21 = vpack.c.bf16 %v2617_v20, %v2616_v18  ;;  %v733_v22 = vpop.f32.mrb[31].mxu0  ;;  %2629 = vmatpush3.bf16.msra.mxu1 %v750_v14 }
 0x376   :  { %v751_v23 = vpack.c.bf16 %v733_v22, %v730_v19 }
 0x378   :  { %2630 = vmatprep.subr.bf16.mxu1 %v751_v23 }
 0x379   :  { %2631 = vmatpush3.bf16.msra.mxu1 %v751_v23 }
 0x37a   :  { %2632 = vmatprep.subr.bf16.mxu1 %v752_v21 }
 0x37d   :  { %2633 = vmatpush3.bf16.msra.mxu1 %v752_v21 }
 0x380   :  { %2635 = vmatmul.mubr.bf16.vlgmr.msra.gmra.mrb[16].mxu1 %v3504_v47 }
 0x381   :  { %2638 = vmatprep.mubr.bf16.mxu1 %v3506_v48 }
 0x388   :  { %2639 = vmatmul.mubr.bf16.gmra.mrb[20].mxu1 %v3510_v49 }
 0x389   :  { %2642 = vmatprep.mubr.bf16.mxu1 %v3512_v50 }
 0x390   :  { %2643 = vmatmul.mubr.bf16.gmra.mrb[24].mxu1 %v3516_v51 }
 0x391   :  { %2646 = vmatprep.mubr.bf16.mxu1 %v3518_v52 }
 0x398   :  { %2647 = vmatmul.mubr.bf16.gmra.mrb[28].mxu1 %v3522_v53 }
 0x399   :  { %2698 = vmatprep.mubr.bf16.mxu1 %v3501_v16 }
 0x453   :  { %v2636_v27 = vpop.f32.mrb[16].mxu1 }
 0x454   :  { %v802_v28 = vadd.f32 %v2636_v27, %v2293_v26  ;;  %v793_v29 = vpop.f32.mrb[17].mxu1 }
 0x455   :  { %v794_v30 = vadd.f32 %v2293_v26, %v793_v29  ;;  %v2637_v31 = vpop.f32.mrb[18].mxu1  ;;  %v2960_v29 = vld [vmem:[#allocation11 + $0x8] sm:$0xff]  }
 0x456   :  { %v805_v32 = vadd.f32 %v2637_v31, %v2293_v26  ;;  %v796_v33 = vpop.f32.mrb[19].mxu1  ;;  %v858_v35 = vmax.f32 %v802_v28, 0.0  ;;  %v2959_v28 = vld [vmem:[#allocation11] sm:$0xff]   ;;  %v2962_v31 = vld [vmem:[#allocation11 + $0x18] sm:$0xff]  }
 0x457   :  { %v797_v34 = vadd.f32 %v2293_v26, %v796_v33  ;;  %v856_v37 = vmax.f32 %v794_v30, 0.0  ;;  %2714 = vmatprep.subr.bf16.mxu0 %v2959_v28  ;;  %v2961_v30 = vld [vmem:[#allocation11 + $0x10] sm:$0xff]  }
 0x458   :  { %v859_v36 = vmax.f32 %v805_v32, 0.0  ;;  %v2964_v32 = vld [vmem:[#allocation11 + $0x28] sm:$0xff]  }
 0x459   :  { %v857_v38 = vmax.f32 %v797_v34, 0.0 }
 0x45a   :  { %v890_v39 = vpack.c.bf16 %v859_v36, %v858_v35 }
 0x45b   :  { %v889_v40 = vpack.c.bf16 %v857_v38, %v856_v37  ;;  %v2640_v41 = vpop.f32.mrb[20].mxu1 }
 0x45c   :  { %v818_v42 = vadd.f32 %v2640_v41, %v2293_v26  ;;  %v809_v43 = vpop.f32.mrb[21].mxu1 }
 0x45d   :  { %v810_v44 = vadd.f32 %v2293_v26, %v809_v43  ;;  %v2641_v45 = vpop.f32.mrb[22].mxu1  ;;  %2666 = vmatprep.mubr.bf16.mxu0 %v889_v40 }
 0x45e   :  { %v821_v46 = vadd.f32 %v2641_v45, %v2293_v26  ;;  %v812_v54 = vpop.f32.mrb[23].mxu1  ;;  %2667 = vmatmul.mubr.bf16.vlgmr.msra.gmra.mrb[32].mxu0 %v890_v39  ;;  %v862_v57 = vmax.f32 %v818_v42, 0.0 }
 0x45f   :  { %v813_v55 = vadd.f32 %v2293_v26, %v812_v54  ;;  %v860_v59 = vmax.f32 %v810_v44, 0.0  ;;  %2715 = vmatpush3.bf16.msra.mxu0 %v2959_v28 }
 0x460   :  { %v863_v58 = vmax.f32 %v821_v46, 0.0  ;;  %2716 = vmatprep.subr.bf16.mxu0 %v2960_v29 }
 0x461   :  { %v861_v60 = vmax.f32 %v813_v55, 0.0 }
 0x462   :  { %v892_v61 = vpack.c.bf16 %v863_v58, %v862_v57 }
 0x463   :  { %v891_v56 = vpack.c.bf16 %v861_v60, %v860_v59  ;;  %v2644_v62 = vpop.f32.mrb[24].mxu1  ;;  %2717 = vmatpush3.bf16.msra.mxu0 %v2960_v29 }
 0x464   :  { %v834_v63 = vadd.f32 %v2644_v62, %v2293_v26  ;;  %v825_v0 = vpop.f32.mrb[25].mxu1  ;;  %2718 = vmatprep.subr.bf16.mxu0 %v2961_v30 }
 0x465   :  { %v826_v1 = vadd.f32 %v2293_v26, %v825_v0  ;;  %v2645_v2 = vpop.f32.mrb[26].mxu1  ;;  %2670 = vmatprep.mubr.bf16.mxu0 %v891_v56  ;;  %v2965_v0 = vld [vmem:[#allocation11 + $0x30] sm:$0xff]  }
 0x466   :  { %v837_v3 = vadd.f32 %v2645_v2, %v2293_v26  ;;  %v828_v4 = vpop.f32.mrb[27].mxu1  ;;  %2671 = vmatmul.mubr.bf16.gmra.mrb[36].mxu0 %v892_v61  ;;  %v866_v6 = vmax.f32 %v834_v63, 0.0  ;;  %v2302_v2 = vld [vmem:[%s3738_s7] ss:$0 sm:$0xff] }
 0x467   :  { %v829_v5 = vadd.f32 %v2293_v26, %v828_v4  ;;  %v864_v8 = vmax.f32 %v826_v1, 0.0  ;;  %2719 = vmatpush3.bf16.msra.mxu0 %v2961_v30  ;;  %v2966_v1 = vld [vmem:[#allocation11 + $0x38] sm:$0xff]  }
 0x468   :  { %v867_v7 = vmax.f32 %v837_v3, 0.0  ;;  %2720 = vmatprep.subr.bf16.mxu0 %v2962_v31 }
 0x469   :  { %v865_v9 = vmax.f32 %v829_v5, 0.0 }
 0x46a   :  { %v894_v10 = vpack.c.bf16 %v867_v7, %v866_v6 }
 0x46b   :  { %v893_v11 = vpack.c.bf16 %v865_v9, %v864_v8  ;;  %v2648_v12 = vpop.f32.mrb[28].mxu1  ;;  %2721 = vmatpush3.bf16.msra.mxu0 %v2962_v31 }
 0x46c   :  { %v850_v13 = vadd.f32 %v2648_v12, %v2293_v26  ;;  %v841_v14 = vpop.f32.mrb[29].mxu1 }
 0x46d   :  { %v842_v15 = vadd.f32 %v2293_v26, %v841_v14  ;;  %v2649_v17 = vpop.f32.mrb[30].mxu1  ;;  %2674 = vmatprep.mubr.bf16.mxu0 %v893_v11 }
 0x46e   :  { %v853_v18 = vadd.f32 %v2649_v17, %v2293_v26  ;;  %v844_v19 = vpop.f32.mrb[31].mxu1  ;;  %2675 = vmatmul.mubr.bf16.gmra.mrb[40].mxu0 %v894_v10  ;;  %v870_v21 = vmax.f32 %v850_v13, 0.0 }
 0x46f   :  { %v845_v20 = vadd.f32 %v2293_v26, %v844_v19  ;;  %v868_v23 = vmax.f32 %v842_v15, 0.0  ;;  %v2963_v26 = vld [vmem:[#allocation11 + $0x20] sm:$0xff]  }
 0x470   :  { %v871_v22 = vmax.f32 %v853_v18, 0.0  ;;  %2722 = vmatprep.subr.bf16.mxu0 %v2963_v26 }
 0x471   :  { %v869_v24 = vmax.f32 %v845_v20, 0.0  ;;  %2723 = vmatpush3.bf16.msra.mxu0 %v2963_v26 }
 0x472   :  { %v896_v25 = vpack.c.bf16 %v871_v22, %v870_v21  ;;  %2724 = vmatprep.subr.bf16.mxu0 %v2964_v32 }
 0x473   :  { %v895_v27 = vpack.c.bf16 %v869_v24, %v868_v23 }
 0x475   :  { %2678 = vmatprep.mubr.bf16.mxu0 %v895_v27  ;;  %2725 = vmatpush3.bf16.msra.mxu0 %v2964_v32 }
 0x476   :  { %2679 = vmatmul.mubr.bf16.gmra.mrb[44].mxu0 %v896_v25  ;;  %2726 = vmatprep.subr.bf16.mxu0 %v2965_v0 }
 0x479   :  { %2727 = vmatpush3.bf16.msra.mxu0 %v2965_v0 }
 0x47a   :  { %2728 = vmatprep.subr.bf16.mxu0 %v2966_v1 }
 0x47d   :  { %2729 = vmatpush3.bf16.msra.mxu0 %v2966_v1 }
 0x531   :  { %v2668_v33 = vpop.f32.mrb[32].mxu0 }
 0x532   :  { %v979_v34 = vpop.f32.mrb[33].mxu0 }
 0x533   :  { %v2669_v35 = vpop.f32.mrb[34].mxu0 }
 0x534   :  { %v1043_v36 = vpack.c.bf16 %v2669_v35, %v2668_v33  ;;  %v982_v37 = vpop.f32.mrb[35].mxu0 }
 0x535   :  { %v1042_v38 = vpack.c.bf16 %v982_v37, %v979_v34 }
 0x537   :  { %2682 = vmatprep.subr.bf16.mxu1 %v1042_v38 }
 0x538   :  { %2683 = vmatpush3.bf16.msra.mxu1 %v1042_v38 }
 0x539   :  { %v2672_v39 = vpop.f32.mrb[36].mxu0  ;;  %2684 = vmatprep.subr.bf16.mxu1 %v1043_v36 }
 0x53a   :  { %v995_v40 = vpop.f32.mrb[37].mxu0 }
 0x53b   :  { %v2673_v41 = vpop.f32.mrb[38].mxu0 }
 0x53c   :  { %v1045_v42 = vpack.c.bf16 %v2673_v41, %v2672_v39  ;;  %v998_v43 = vpop.f32.mrb[39].mxu0  ;;  %2685 = vmatpush3.bf16.msra.mxu1 %v1043_v36 }
 0x53d   :  { %v1044_v44 = vpack.c.bf16 %v998_v43, %v995_v40 }
 0x53f   :  { %2686 = vmatprep.subr.bf16.mxu1 %v1044_v44 }
 0x540   :  { %2687 = vmatpush3.bf16.msra.mxu1 %v1044_v44 }
 0x541   :  { %v2676_v45 = vpop.f32.mrb[40].mxu0  ;;  %2688 = vmatprep.subr.bf16.mxu1 %v1045_v42 }
 0x542   :  { %v1011_v46 = vpop.f32.mrb[41].mxu0 }
 0x543   :  { %v2677_v54 = vpop.f32.mrb[42].mxu0 }
 0x544   :  { %v1047_v55 = vpack.c.bf16 %v2677_v54, %v2676_v45  ;;  %v1014_v57 = vpop.f32.mrb[43].mxu0  ;;  %2689 = vmatpush3.bf16.msra.mxu1 %v1045_v42 }
 0x545   :  { %v1046_v58 = vpack.c.bf16 %v1014_v57, %v1011_v46 }
 0x547   :  { %2690 = vmatprep.subr.bf16.mxu1 %v1046_v58 }
 0x548   :  { %2691 = vmatpush3.bf16.msra.mxu1 %v1046_v58 }
 0x549   :  { %v2680_v59 = vpop.f32.mrb[44].mxu0  ;;  %2692 = vmatprep.subr.bf16.mxu1 %v1047_v55 }
 0x54a   :  { %v1027_v60 = vpop.f32.mrb[45].mxu0 }
 0x54b   :  { %v2681_v61 = vpop.f32.mrb[46].mxu0 }
 0x54c   :  { %v1049_v56 = vpack.c.bf16 %v2681_v61, %v2680_v59  ;;  %v1030_v62 = vpop.f32.mrb[47].mxu0  ;;  %2693 = vmatpush3.bf16.msra.mxu1 %v1047_v55 }
 0x54d   :  { %v1048_v63 = vpack.c.bf16 %v1030_v62, %v1027_v60 }
 0x54f   :  { %2694 = vmatprep.subr.bf16.mxu1 %v1048_v63 }
 0x550   :  { %2695 = vmatpush3.bf16.msra.mxu1 %v1048_v63 }
 0x551   :  { %2696 = vmatprep.subr.bf16.mxu1 %v1049_v56 }
 0x554   :  { %2697 = vmatpush3.bf16.msra.mxu1 %v1049_v56 }
 0x557   :  { %2699 = vmatmul.mubr.bf16.vlgmr.msra.gmra.mrb[32].mxu1 %v3504_v47 }
 0x558   :  { %2702 = vmatprep.mubr.bf16.mxu1 %v3506_v48 }
 0x55f   :  { %2703 = vmatmul.mubr.bf16.gmra.mrb[36].mxu1 %v3510_v49 }
 0x560   :  { %2706 = vmatprep.mubr.bf16.mxu1 %v3512_v50 }
 0x567   :  { %2707 = vmatmul.mubr.bf16.gmra.mrb[40].mxu1 %v3516_v51 }
 0x568   :  { %2710 = vmatprep.mubr.bf16.mxu1 %v3518_v52 }
 0x56f   :  { %2711 = vmatmul.mubr.bf16.gmra.mrb[44].mxu1 %v3522_v53 }
 0x570   :  { %2762 = vmatprep.mubr.bf16.mxu1 %v3501_v16 }
 0x62a   :  { %v2700_v3 = vpop.f32.mrb[32].mxu1 }
 0x62b   :  { %v1099_v4 = vadd.f32 %v2700_v3, %v2302_v2  ;;  %v1090_v5 = vpop.f32.mrb[33].mxu1 }
 0x62c   :  { %v1091_v6 = vadd.f32 %v2302_v2, %v1090_v5  ;;  %v2701_v7 = vpop.f32.mrb[34].mxu1  ;;  %v2968_v5 = vld [vmem:[#allocation13 + $0x8] sm:$0xff]  }
 0x62d   :  { %v1102_v8 = vadd.f32 %v2701_v7, %v2302_v2  ;;  %v1093_v9 = vpop.f32.mrb[35].mxu1  ;;  %v1155_v11 = vmax.f32 %v1099_v4, 0.0  ;;  %v2967_v4 = vld [vmem:[#allocation13] sm:$0xff]   ;;  %v2970_v7 = vld [vmem:[#allocation13 + $0x18] sm:$0xff]  }
 0x62e   :  { %v1094_v10 = vadd.f32 %v2302_v2, %v1093_v9  ;;  %v1153_v13 = vmax.f32 %v1091_v6, 0.0  ;;  %2778 = vmatprep.subr.bf16.mxu0 %v2967_v4  ;;  %v2969_v6 = vld [vmem:[#allocation13 + $0x10] sm:$0xff]  }
 0x62f   :  { %v1156_v12 = vmax.f32 %v1102_v8, 0.0  ;;  %v2972_v8 = vld [vmem:[#allocation13 + $0x28] sm:$0xff]  }
 0x630   :  { %v1154_v14 = vmax.f32 %v1094_v10, 0.0 }
 0x631   :  { %v1187_v15 = vpack.c.bf16 %v1156_v12, %v1155_v11 }
 0x632   :  { %v1186_v17 = vpack.c.bf16 %v1154_v14, %v1153_v13  ;;  %v2704_v18 = vpop.f32.mrb[36].mxu1 }
 0x633   :  { %v1115_v19 = vadd.f32 %v2704_v18, %v2302_v2  ;;  %v1106_v20 = vpop.f32.mrb[37].mxu1 }
 0x634   :  { %v1107_v21 = vadd.f32 %v2302_v2, %v1106_v20  ;;  %v2705_v22 = vpop.f32.mrb[38].mxu1  ;;  %2730 = vmatprep.mubr.bf16.mxu0 %v1186_v17 }
 0x635   :  { %v1118_v23 = vadd.f32 %v2705_v22, %v2302_v2  ;;  %v1109_v24 = vpop.f32.mrb[39].mxu1  ;;  %2731 = vmatmul.mubr.bf16.vlgmr.msra.gmra.mrb[48].mxu0 %v1187_v15  ;;  %v1159_v27 = vmax.f32 %v1115_v19, 0.0 }
 0x636   :  { %v1110_v25 = vadd.f32 %v2302_v2, %v1109_v24  ;;  %v1157_v29 = vmax.f32 %v1107_v21, 0.0  ;;  %2779 = vmatpush3.bf16.msra.mxu0 %v2967_v4 }
 0x637   :  { %v1160_v28 = vmax.f32 %v1118_v23, 0.0  ;;  %2780 = vmatprep.subr.bf16.mxu0 %v2968_v5 }
 0x638   :  { %v1158_v30 = vmax.f32 %v1110_v25, 0.0 }
 0x639   :  { %v1189_v31 = vpack.c.bf16 %v1160_v28, %v1159_v27 }
 0x63a   :  { %v1188_v26 = vpack.c.bf16 %v1158_v30, %v1157_v29  ;;  %v2708_v32 = vpop.f32.mrb[40].mxu1  ;;  %2781 = vmatpush3.bf16.msra.mxu0 %v2968_v5 }
 0x63b   :  { %v1131_v33 = vadd.f32 %v2708_v32, %v2302_v2  ;;  %v1122_v34 = vpop.f32.mrb[41].mxu1  ;;  %2782 = vmatprep.subr.bf16.mxu0 %v2969_v6 }
 0x63c   :  { %v1123_v35 = vadd.f32 %v2302_v2, %v1122_v34  ;;  %v2709_v36 = vpop.f32.mrb[42].mxu1  ;;  %2734 = vmatprep.mubr.bf16.mxu0 %v1188_v26  ;;  %v2973_v34 = vld [vmem:[#allocation13 + $0x30] sm:$0xff]  }
 0x63d   :  { %v1134_v37 = vadd.f32 %v2709_v36, %v2302_v2  ;;  %v1125_v38 = vpop.f32.mrb[43].mxu1  ;;  %2735 = vmatmul.mubr.bf16.gmra.mrb[52].mxu0 %v1189_v31  ;;  %v1163_v40 = vmax.f32 %v1131_v33, 0.0 }
 0x63e   :  { %v1126_v39 = vadd.f32 %v2302_v2, %v1125_v38  ;;  %v1161_v42 = vmax.f32 %v1123_v35, 0.0  ;;  %2783 = vmatpush3.bf16.msra.mxu0 %v2969_v6  ;;  %v2974_v35 = vld [vmem:[#allocation13 + $0x38] sm:$0xff]  }
 0x63f   :  { %v1164_v41 = vmax.f32 %v1134_v37, 0.0  ;;  %2784 = vmatprep.subr.bf16.mxu0 %v2970_v7 }
 0x640   :  { %v1162_v43 = vmax.f32 %v1126_v39, 0.0 }
 0x641   :  { %v1191_v44 = vpack.c.bf16 %v1164_v41, %v1163_v40 }
 0x642   :  { %v1190_v45 = vpack.c.bf16 %v1162_v43, %v1161_v42  ;;  %v2712_v46 = vpop.f32.mrb[44].mxu1  ;;  %2785 = vmatpush3.bf16.msra.mxu0 %v2970_v7 }
 0x643   :  { %v1147_v54 = vadd.f32 %v2712_v46, %v2302_v2  ;;  %v1138_v55 = vpop.f32.mrb[45].mxu1 }
 0x644   :  { %v1139_v57 = vadd.f32 %v2302_v2, %v1138_v55  ;;  %v2713_v58 = vpop.f32.mrb[46].mxu1  ;;  %2738 = vmatprep.mubr.bf16.mxu0 %v1190_v45 }
 0x645   :  { %v1150_v59 = vadd.f32 %v2713_v58, %v2302_v2  ;;  %v1141_v60 = vpop.f32.mrb[47].mxu1  ;;  %2739 = vmatmul.mubr.bf16.gmra.mrb[56].mxu0 %v1191_v44  ;;  %v1167_v56 = vmax.f32 %v1147_v54, 0.0 }
 0x646   :  { %v1142_v61 = vadd.f32 %v2302_v2, %v1141_v60  ;;  %v1165_v63 = vmax.f32 %v1139_v57, 0.0  ;;  %v2971_v2 = vld [vmem:[#allocation13 + $0x20] sm:$0xff]  }
 0x647   :  { %v1168_v62 = vmax.f32 %v1150_v59, 0.0  ;;  %2786 = vmatprep.subr.bf16.mxu0 %v2971_v2 }
 0x648   :  { %v1166_v0 = vmax.f32 %v1142_v61, 0.0  ;;  %2787 = vmatpush3.bf16.msra.mxu0 %v2971_v2 }
 0x649   :  { %v1193_v1 = vpack.c.bf16 %v1168_v62, %v1167_v56  ;;  %2788 = vmatprep.subr.bf16.mxu0 %v2972_v8 }
 0x64a   :  { %v1192_v3 = vpack.c.bf16 %v1166_v0, %v1165_v63 }
 0x64c   :  { %2742 = vmatprep.mubr.bf16.mxu0 %v1192_v3  ;;  %2789 = vmatpush3.bf16.msra.mxu0 %v2972_v8 }
 0x64d   :  { %2743 = vmatmul.mubr.bf16.gmra.mrb[60].mxu0 %v1193_v1  ;;  %2790 = vmatprep.subr.bf16.mxu0 %v2973_v34 }
 0x650   :  { %2791 = vmatpush3.bf16.msra.mxu0 %v2973_v34  ;;  %v2980_v34 = vld [vmem:[#allocation14 + $0x28] sm:$0xff]  }
 0x651   :  { %2792 = vmatprep.subr.bf16.mxu0 %v2974_v35 }
 0x654   :  { %2793 = vmatpush3.bf16.msra.mxu0 %v2974_v35 }
 0x708   :  { %v2732_v9 = vpop.f32.mrb[48].mxu0 }
 0x709   :  { %v1276_v10 = vpop.f32.mrb[49].mxu0 }
 0x70a   :  { %v2733_v11 = vpop.f32.mrb[50].mxu0 }
 0x70b   :  { %v1340_v12 = vpack.c.bf16 %v2733_v11, %v2732_v9  ;;  %v1279_v13 = vpop.f32.mrb[51].mxu0 }
 0x70c   :  { %v1339_v14 = vpack.c.bf16 %v1279_v13, %v1276_v10 }
 0x70e   :  { %2746 = vmatprep.subr.bf16.mxu1 %v1339_v14 }
 0x70f   :  { %2747 = vmatpush3.bf16.msra.mxu1 %v1339_v14 }
 0x710   :  { %v2736_v15 = vpop.f32.mrb[52].mxu0  ;;  %2748 = vmatprep.subr.bf16.mxu1 %v1340_v12 }
 0x711   :  { %v1292_v17 = vpop.f32.mrb[53].mxu0 }
 0x712   :  { %v2737_v18 = vpop.f32.mrb[54].mxu0 }
 0x713   :  { %v1342_v19 = vpack.c.bf16 %v2737_v18, %v2736_v15  ;;  %v1295_v20 = vpop.f32.mrb[55].mxu0  ;;  %2749 = vmatpush3.bf16.msra.mxu1 %v1340_v12 }
 0x714   :  { %v1341_v21 = vpack.c.bf16 %v1295_v20, %v1292_v17 }
 0x716   :  { %2750 = vmatprep.subr.bf16.mxu1 %v1341_v21 }
 0x717   :  { %2751 = vmatpush3.bf16.msra.mxu1 %v1341_v21 }
 0x718   :  { %v2740_v22 = vpop.f32.mrb[56].mxu0  ;;  %2752 = vmatprep.subr.bf16.mxu1 %v1342_v19 }
 0x719   :  { %v1308_v23 = vpop.f32.mrb[57].mxu0 }
 0x71a   :  { %v2741_v24 = vpop.f32.mrb[58].mxu0 }
 0x71b   :  { %v1344_v25 = vpack.c.bf16 %v2741_v24, %v2740_v22  ;;  %v1311_v27 = vpop.f32.mrb[59].mxu0  ;;  %2753 = vmatpush3.bf16.msra.mxu1 %v1342_v19 }
 0x71c   :  { %v1343_v28 = vpack.c.bf16 %v1311_v27, %v1308_v23 }
 0x71e   :  { %2754 = vmatprep.subr.bf16.mxu1 %v1343_v28 }
 0x71f   :  { %2755 = vmatpush3.bf16.msra.mxu1 %v1343_v28 }
 0x720   :  { %v2744_v29 = vpop.f32.mrb[60].mxu0  ;;  %2756 = vmatprep.subr.bf16.mxu1 %v1344_v25 }
 0x721   :  { %v1324_v30 = vpop.f32.mrb[61].mxu0 }
 0x722   :  { %v2745_v31 = vpop.f32.mrb[62].mxu0 }
 0x723   :  { %v1346_v26 = vpack.c.bf16 %v2745_v31, %v2744_v29  ;;  %v1327_v32 = vpop.f32.mrb[63].mxu0  ;;  %2757 = vmatpush3.bf16.msra.mxu1 %v1344_v25  ;;  %v2976_v31 = vld [vmem:[#allocation14 + $0x8] sm:$0xff]  }
 0x724   :  { %v1345_v33 = vpack.c.bf16 %v1327_v32, %v1324_v30  ;;  %v2975_v30 = vld [vmem:[#allocation14] sm:$0xff]   ;;  %v2978_v32 = vld [vmem:[#allocation14 + $0x18] sm:$0xff]  }
 0x725   :  { %2842 = vmatprep.subr.bf16.mxu0 %v2975_v30 }
 0x726   :  { %2758 = vmatprep.subr.bf16.mxu1 %v1345_v33 }
 0x727   :  { %2759 = vmatpush3.bf16.msra.mxu1 %v1345_v33  ;;  %v2979_v33 = vld [vmem:[#allocation14 + $0x20] sm:$0xff]  }
 0x728   :  { %2760 = vmatprep.subr.bf16.mxu1 %v1346_v26 }
 0x72b   :  { %2761 = vmatpush3.bf16.msra.mxu1 %v1346_v26  ;;  %v2977_v26 = vld [vmem:[#allocation14 + $0x10] sm:$0xff]  }
 0x72e   :  { %2763 = vmatmul.mubr.bf16.vlgmr.msra.gmra.mrb[48].mxu1 %v3504_v47  ;;  %v2311_v47 = vld [vmem:[%s3740_s9] ss:$0 sm:$0xff] }
 0x72f   :  { %2766 = vmatprep.mubr.bf16.mxu1 %v3506_v48 }
 0x736   :  { %2767 = vmatmul.mubr.bf16.gmra.mrb[52].mxu1 %v3510_v49 }
 0x737   :  { %2770 = vmatprep.mubr.bf16.mxu1 %v3512_v50 }
 0x73e   :  { %2771 = vmatmul.mubr.bf16.gmra.mrb[56].mxu1 %v3516_v51 }
 0x73f   :  { %2774 = vmatprep.mubr.bf16.mxu1 %v3518_v52 }
 0x746   :  { %2775 = vmatmul.mubr.bf16.gmra.mrb[60].mxu1 %v3522_v53 }
 0x747   :  { %2826 = vmatprep.mubr.bf16.mxu1 %v3501_v16 }
 0x801   :  { %v2764_v48 = vpop.f32.mrb[48].mxu1 }
 0x802   :  { %v1396_v49 = vadd.f32 %v2764_v48, %v2311_v47  ;;  %v1387_v50 = vpop.f32.mrb[49].mxu1 }
 0x803   :  { %v1388_v51 = vadd.f32 %v2311_v47, %v1387_v50  ;;  %v2765_v36 = vpop.f32.mrb[50].mxu1 }
 0x804   :  { %v1399_v52 = vadd.f32 %v2765_v36, %v2311_v47  ;;  %v1390_v37 = vpop.f32.mrb[51].mxu1  ;;  %v1452_v38 = vmax.f32 %v1396_v49, 0.0 }
 0x805   :  { %v1391_v53 = vadd.f32 %v2311_v47, %v1390_v37  ;;  %v1450_v39 = vmax.f32 %v1388_v51, 0.0 }
 0x806   :  { %v1453_v16 = vmax.f32 %v1399_v52, 0.0 }
 0x807   :  { %v1451_v40 = vmax.f32 %v1391_v53, 0.0 }
 0x808   :  { %v1484_v41 = vpack.c.bf16 %v1453_v16, %v1452_v38 }
 0x809   :  { %v1483_v42 = vpack.c.bf16 %v1451_v40, %v1450_v39  ;;  %v2768_v43 = vpop.f32.mrb[52].mxu1 }
 0x80a   :  { %v1412_v44 = vadd.f32 %v2768_v43, %v2311_v47  ;;  %v1403_v45 = vpop.f32.mrb[53].mxu1 }
 0x80b   :  { %v1404_v46 = vadd.f32 %v2311_v47, %v1403_v45  ;;  %v2769_v54 = vpop.f32.mrb[54].mxu1  ;;  %2794 = vmatprep.mubr.bf16.mxu0 %v1483_v42 }
 0x80c   :  { %v1415_v55 = vadd.f32 %v2769_v54, %v2311_v47  ;;  %v1406_v57 = vpop.f32.mrb[55].mxu1  ;;  %2795 = vmatmul.mubr.bf16.vlgmr.msra.gmra.mrb[64].mxu0 %v1484_v41  ;;  %v1456_v59 = vmax.f32 %v1412_v44, 0.0 }
 0x80d   :  { %v1407_v58 = vadd.f32 %v2311_v47, %v1406_v57  ;;  %v1454_v61 = vmax.f32 %v1404_v46, 0.0  ;;  %2843 = vmatpush3.bf16.msra.mxu0 %v2975_v30 }
 0x80e   :  { %v1457_v60 = vmax.f32 %v1415_v55, 0.0  ;;  %2844 = vmatprep.subr.bf16.mxu0 %v2976_v31 }
 0x80f   :  { %v1455_v56 = vmax.f32 %v1407_v58, 0.0 }
 0x810   :  { %v1486_v62 = vpack.c.bf16 %v1457_v60, %v1456_v59  ;;  %v3562_v59 = vld [vmem:[#allocation2 + $0x8] sm:$0xff]   ;;  %v3565_v60 = vld [vmem:[#allocation2 + $0x10] sm:$0xff]  }
 0x811   :  { %v1485_v63 = vpack.c.bf16 %v1455_v56, %v1454_v61  ;;  %v2772_v0 = vpop.f32.mrb[56].mxu1  ;;  %2845 = vmatpush3.bf16.msra.mxu0 %v2976_v31  ;;  %v3568_v61 = vld [vmem:[#allocation2 + $0x18] sm:$0xff]   ;;  %v3571_v56 = vld [vmem:[#allocation2 + $0x20] sm:$0xff]  }
 0x812   :  { %v1428_v1 = vadd.f32 %v2772_v0, %v2311_v47  ;;  %v1419_v3 = vpop.f32.mrb[57].mxu1  ;;  %2846 = vmatprep.subr.bf16.mxu0 %v2977_v26  ;;  %v3580_v0 = vld [vmem:[#allocation2 + $0x38] sm:$0xff]  }
 0x813   :  { %v1420_v4 = vadd.f32 %v2311_v47, %v1419_v3  ;;  %v2773_v5 = vpop.f32.mrb[58].mxu1  ;;  %2798 = vmatprep.mubr.bf16.mxu0 %v1485_v63  ;;  %v3577_v63 = vld [vmem:[#allocation2 + $0x30] sm:$0xff]  }
 0x814   :  { %v1431_v6 = vadd.f32 %v2773_v5, %v2311_v47  ;;  %v1422_v7 = vpop.f32.mrb[59].mxu1  ;;  %2799 = vmatmul.mubr.bf16.gmra.mrb[68].mxu0 %v1486_v62  ;;  %v1460_v8 = vmax.f32 %v1428_v1, 0.0  ;;  %v3574_v62 = vld [vmem:[#allocation2 + $0x28] sm:$0xff]   ;;  %v3054_v1 = vld [vmem:[#allocation2] sm:$0xff]   ;;  %v2981_v3 = vld [vmem:[#allocation14 + $0x30] sm:$0xff]  }
 0x815   :  { %v1423_v2 = vadd.f32 %v2311_v47, %v1422_v7  ;;  %v1458_v10 = vmax.f32 %v1420_v4, 0.0  ;;  %2847 = vmatpush3.bf16.msra.mxu0 %v2977_v26  ;;  %v2982_v4 = vld [vmem:[#allocation14 + $0x38] sm:$0xff]   ;;  %v2320_v5 = vld [vmem:[%s3742_s11] ss:$0 sm:$0xff] }
 0x816   :  { %v1461_v9 = vmax.f32 %v1431_v6, 0.0  ;;  %2848 = vmatprep.subr.bf16.mxu0 %v2978_v32 }
 0x817   :  { %v1459_v11 = vmax.f32 %v1423_v2, 0.0 }
 0x818   :  { %v1488_v12 = vpack.c.bf16 %v1461_v9, %v1460_v8 }
 0x819   :  { %v1487_v13 = vpack.c.bf16 %v1459_v11, %v1458_v10  ;;  %v2776_v14 = vpop.f32.mrb[60].mxu1  ;;  %2849 = vmatpush3.bf16.msra.mxu0 %v2978_v32 }
 0x81a   :  { %v1444_v15 = vadd.f32 %v2776_v14, %v2311_v47  ;;  %v1435_v17 = vpop.f32.mrb[61].mxu1  ;;  %2850 = vmatprep.subr.bf16.mxu0 %v2979_v33 }
 0x81b   :  { %v1436_v18 = vadd.f32 %v2311_v47, %v1435_v17  ;;  %v2777_v19 = vpop.f32.mrb[62].mxu1  ;;  %2802 = vmatprep.mubr.bf16.mxu0 %v1487_v13 }
 0x81c   :  { %v1447_v20 = vadd.f32 %v2777_v19, %v2311_v47  ;;  %v1438_v21 = vpop.f32.mrb[63].mxu1  ;;  %2803 = vmatmul.mubr.bf16.gmra.mrb[72].mxu0 %v1488_v12  ;;  %v1464_v23 = vmax.f32 %v1444_v15, 0.0 }
 0x81d   :  { %v1439_v22 = vadd.f32 %v2311_v47, %v1438_v21  ;;  %v1462_v25 = vmax.f32 %v1436_v18, 0.0  ;;  %2851 = vmatpush3.bf16.msra.mxu0 %v2979_v33 }
 0x81e   :  { %v1465_v24 = vmax.f32 %v1447_v20, 0.0  ;;  %2852 = vmatprep.subr.bf16.mxu0 %v2980_v34 }
 0x81f   :  { %v1463_v27 = vmax.f32 %v1439_v22, 0.0 }
 0x820   :  { %v1490_v28 = vpack.c.bf16 %v1465_v24, %v1464_v23 }
 0x821   :  { %v1489_v29 = vpack.c.bf16 %v1463_v27, %v1462_v25  ;;  %2853 = vmatpush3.bf16.msra.mxu0 %v2980_v34 }
 0x822   :  { %2854 = vmatprep.subr.bf16.mxu0 %v2981_v3 }
 0x823   :  { %2806 = vmatprep.mubr.bf16.mxu0 %v1489_v29 }
 0x824   :  { %2807 = vmatmul.mubr.bf16.gmra.mrb[76].mxu0 %v1490_v28 }
 0x825   :  { %2855 = vmatpush3.bf16.msra.mxu0 %v2981_v3 }
 0x826   :  { %2856 = vmatprep.subr.bf16.mxu0 %v2982_v4 }
 0x829   :  { %2857 = vmatpush3.bf16.msra.mxu0 %v2982_v4 }
 0x8df   :  { %v2796_v35 = vpop.f32.mrb[64].mxu0 }
 0x8e0   :  { %v1573_v47 = vpop.f32.mrb[65].mxu0 }
 0x8e1   :  { %v2797_v48 = vpop.f32.mrb[66].mxu0 }
 0x8e2   :  { %v1637_v49 = vpack.c.bf16 %v2797_v48, %v2796_v35  ;;  %v1576_v50 = vpop.f32.mrb[67].mxu0 }
 0x8e3   :  { %v1636_v51 = vpack.c.bf16 %v1576_v50, %v1573_v47 }
 0x8e5   :  { %2810 = vmatprep.subr.bf16.mxu1 %v1636_v51 }
 0x8e6   :  { %2811 = vmatpush3.bf16.msra.mxu1 %v1636_v51 }
 0x8e7   :  { %v2800_v36 = vpop.f32.mrb[68].mxu0  ;;  %2812 = vmatprep.subr.bf16.mxu1 %v1637_v49 }
 0x8e8   :  { %v1589_v52 = vpop.f32.mrb[69].mxu0 }
 0x8e9   :  { %v2801_v37 = vpop.f32.mrb[70].mxu0 }
 0x8ea   :  { %v1639_v53 = vpack.c.bf16 %v2801_v37, %v2800_v36  ;;  %v1592_v38 = vpop.f32.mrb[71].mxu0  ;;  %2813 = vmatpush3.bf16.msra.mxu1 %v1637_v49 }
 0x8eb   :  { %v1638_v16 = vpack.c.bf16 %v1592_v38, %v1589_v52 }
 0x8ed   :  { %2814 = vmatprep.subr.bf16.mxu1 %v1638_v16 }
 0x8ee   :  { %2815 = vmatpush3.bf16.msra.mxu1 %v1638_v16 }
 0x8ef   :  { %v2804_v39 = vpop.f32.mrb[72].mxu0  ;;  %2816 = vmatprep.subr.bf16.mxu1 %v1639_v53 }
 0x8f0   :  { %v1605_v40 = vpop.f32.mrb[73].mxu0 }
 0x8f1   :  { %v2805_v41 = vpop.f32.mrb[74].mxu0 }
 0x8f2   :  { %v1641_v42 = vpack.c.bf16 %v2805_v41, %v2804_v39  ;;  %v1608_v43 = vpop.f32.mrb[75].mxu0  ;;  %2817 = vmatpush3.bf16.msra.mxu1 %v1639_v53 }
 0x8f3   :  { %v1640_v44 = vpack.c.bf16 %v1608_v43, %v1605_v40 }
 0x8f5   :  { %2818 = vmatprep.subr.bf16.mxu1 %v1640_v44 }
 0x8f6   :  { %2819 = vmatpush3.bf16.msra.mxu1 %v1640_v44 }
 0x8f7   :  { %v2808_v45 = vpop.f32.mrb[76].mxu0  ;;  %2820 = vmatprep.subr.bf16.mxu1 %v1641_v42 }
 0x8f8   :  { %v1621_v46 = vpop.f32.mrb[77].mxu0 }
 0x8f9   :  { %v2809_v54 = vpop.f32.mrb[78].mxu0 }
 0x8fa   :  { %v1643_v55 = vpack.c.bf16 %v2809_v54, %v2808_v45  ;;  %v1624_v57 = vpop.f32.mrb[79].mxu0  ;;  %2821 = vmatpush3.bf16.msra.mxu1 %v1641_v42 }
 0x8fb   :  { %v1642_v58 = vpack.c.bf16 %v1624_v57, %v1621_v46 }
 0x8fd   :  { %2822 = vmatprep.subr.bf16.mxu1 %v1642_v58 }
 0x8fe   :  { %2823 = vmatpush3.bf16.msra.mxu1 %v1642_v58 }
 0x8ff   :  { %2824 = vmatprep.subr.bf16.mxu1 %v1643_v55 }
 0x902   :  { %2825 = vmatpush3.bf16.msra.mxu1 %v1643_v55 }
 0x905   :  { %2827 = vmatmul.mubr.bf16.vlgmr.msra.gmra.mrb[64].mxu1 %v3562_v59 }
 0x906   :  { %2830 = vmatprep.mubr.bf16.mxu1 %v3565_v60 }
 0x90d   :  { %2831 = vmatmul.mubr.bf16.gmra.mrb[68].mxu1 %v3568_v61 }
 0x90e   :  { %2834 = vmatprep.mubr.bf16.mxu1 %v3571_v56 }
 0x915   :  { %2835 = vmatmul.mubr.bf16.gmra.mrb[72].mxu1 %v3574_v62 }
 0x916   :  { %2838 = vmatprep.mubr.bf16.mxu1 %v3577_v63 }
 0x91d   :  { %2839 = vmatmul.mubr.bf16.gmra.mrb[76].mxu1 %v3580_v0 }
 0x91e   :  { %2890 = vmatprep.mubr.bf16.mxu1 %v3054_v1 }
 0x9d8   :  { %v2828_v6 = vpop.f32.mrb[64].mxu1 }
 0x9d9   :  { %v1693_v7 = vadd.f32 %v2828_v6, %v2320_v5  ;;  %v1684_v2 = vpop.f32.mrb[65].mxu1 }
 0x9da   :  { %v1685_v8 = vadd.f32 %v2320_v5, %v1684_v2  ;;  %v2829_v9 = vpop.f32.mrb[66].mxu1 }
 0x9db   :  { %v1696_v10 = vadd.f32 %v2829_v9, %v2320_v5  ;;  %v1687_v11 = vpop.f32.mrb[67].mxu1  ;;  %v1749_v13 = vmax.f32 %v1693_v7, 0.0 }
 0x9dc   :  { %v1688_v12 = vadd.f32 %v2320_v5, %v1687_v11  ;;  %v1747_v15 = vmax.f32 %v1685_v8, 0.0 }
 0x9dd   :  { %v1750_v14 = vmax.f32 %v1696_v10, 0.0 }
 0x9de   :  { %v1748_v17 = vmax.f32 %v1688_v12, 0.0 }
 0x9df   :  { %v1781_v18 = vpack.c.bf16 %v1750_v14, %v1749_v13 }
 0x9e0   :  { %v1780_v19 = vpack.c.bf16 %v1748_v17, %v1747_v15  ;;  %v2832_v20 = vpop.f32.mrb[68].mxu1 }
 0x9e1   :  { %v1709_v21 = vadd.f32 %v2832_v20, %v2320_v5  ;;  %v1700_v22 = vpop.f32.mrb[69].mxu1 }
 0x9e2   :  { %v1701_v23 = vadd.f32 %v2320_v5, %v1700_v22  ;;  %v2833_v24 = vpop.f32.mrb[70].mxu1  ;;  %2858 = vmatprep.mubr.bf16.mxu0 %v1780_v19 }
 0x9e3   :  { %v1712_v25 = vadd.f32 %v2833_v24, %v2320_v5  ;;  %v1703_v27 = vpop.f32.mrb[71].mxu1  ;;  %2859 = vmatmul.mubr.bf16.vlgmr.msra.gmra.mrb[80].mxu0 %v1781_v18  ;;  %v1753_v29 = vmax.f32 %v1709_v21, 0.0 }
 0x9e4   :  { %v1704_v28 = vadd.f32 %v2320_v5, %v1703_v27  ;;  %v1751_v31 = vmax.f32 %v1701_v23, 0.0 }
 0x9e5   :  { %v1754_v30 = vmax.f32 %v1712_v25, 0.0 }
 0x9e6   :  { %v1752_v26 = vmax.f32 %v1704_v28, 0.0 }
 0x9e7   :  { %v1783_v32 = vpack.c.bf16 %v1754_v30, %v1753_v29  ;;  %v2044_v30 = vlaneseq }
 0x9e8   :  { %v1782_v33 = vpack.c.bf16 %v1752_v26, %v1751_v31  ;;  %v2836_v34 = vpop.f32.mrb[72].mxu1  ;;  %v2329_v26 = vld [vmem:[%s3744_s13] ss:$0 sm:$0xff]  ;;  %s3275_s13 = smov [#allocation16]  }
 0x9e9   :  { %v1725_v35 = vadd.f32 %v2836_v34, %v2320_v5  ;;  %v1716_v47 = vpop.f32.mrb[73].mxu1  ;;  %v3593_v31 = vand.u32 127, %v2044_v30  ;;  %s2244_s15 = sshll.u32 %s3275_s13, 4  ;;  %s2245_s15 = int_to_ptr.vmem [resolvable:$true] %s2244_s15 }
 0x9ea   :  { %v1717_v48 = vadd.f32 %v2320_v5, %v1716_v47  ;;  %v2837_v49 = vpop.f32.mrb[74].mxu1  ;;  %2862 = vmatprep.mubr.bf16.mxu0 %v1782_v33  ;;  %s3231_s17 = scalar_lea.vmem %s2245_s15, 2048  ;;  %p3236_p9 = scmp.lt.s32.totalorder %s2245_s15, %s2245_s15 }
 0x9eb   :  { %v1728_v50 = vadd.f32 %v2837_v49, %v2320_v5  ;;  %v1719_v51 = vpop.f32.mrb[75].mxu1  ;;  %2863 = vmatmul.mubr.bf16.gmra.mrb[84].mxu0 %v1783_v32  ;;  %v1757_v52 = vmax.f32 %v1725_v35, 0.0  ;;  %vm2046_vm0 = vcmp.lt.s32.totalorder %v3593_v31, 8  ;;  %p3232_p8 = scmp.ne.s32.totalorder %s2245_s15, %s3231_s17  ;;  %p3237_p10 = scmp.lt.s32.totalorder %s3231_s17, %s3231_s17 }
 0x9ec   :  { %v1720_v36 = vadd.f32 %v2320_v5, %v1719_v51  ;;  %v1755_v53 = vmax.f32 %v1717_v48, 0.0 }
 0x9ed   :  { %v1758_v37 = vmax.f32 %v1728_v50, 0.0  ;;  %p3238_p11 = por %p3237_p10, %p3236_p9 }
 0x9ee   :  { %v1756_v38 = vmax.f32 %v1720_v36, 0.0 }
 0x9ef   :  { %v1785_v16 = vpack.c.bf16 %v1758_v37, %v1757_v52  ;;  %p3239_p12 = pnand %p3238_p11, %p3232_p8 }
 0x9f0   :  { %v1784_v39 = vpack.c.bf16 %v1756_v38, %v1755_v53  ;;  %v2840_v40 = vpop.f32.mrb[76].mxu1 }
 0x9f1   :  { %v1741_v41 = vadd.f32 %v2840_v40, %v2320_v5  ;;  %v1732_v42 = vpop.f32.mrb[77].mxu1 }
 0x9f2   :  { %v1733_v43 = vadd.f32 %v2320_v5, %v1732_v42  ;;  %v2841_v44 = vpop.f32.mrb[78].mxu1  ;;  %2866 = vmatprep.mubr.bf16.mxu0 %v1784_v39 }
 0x9f3   :  { %v1744_v45 = vadd.f32 %v2841_v44, %v2320_v5  ;;  %v1735_v46 = vpop.f32.mrb[79].mxu1  ;;  %2867 = vmatmul.mubr.bf16.gmra.mrb[88].mxu0 %v1785_v16  ;;  %v1761_v55 = vmax.f32 %v1741_v41, 0.0 }
 0x9f4   :  { %v1736_v54 = vadd.f32 %v2320_v5, %v1735_v46  ;;  %v1759_v58 = vmax.f32 %v1733_v43, 0.0 }
 0x9f5   :  { %v1762_v57 = vmax.f32 %v1744_v45, 0.0 }
 0x9f6   :  { %v1760_v1 = vmax.f32 %v1736_v54, 0.0 }
 0x9f7   :  { %v1787_v3 = vpack.c.bf16 %v1762_v57, %v1761_v55 }
 0x9f8   :  { %v1786_v4 = vpack.c.bf16 %v1760_v1, %v1759_v58 }
 0x9fa   :  { %2870 = vmatprep.mubr.bf16.mxu0 %v1786_v4 }
 0x9fb   :  { %2871 = vmatmul.mubr.bf16.gmra.mrb[92].mxu0 %v1787_v3 }
 0xab6   :  { %v2860_v6 = vpop.f32.mrb[80].mxu0 }
 0xab7   :  { %v1870_v7 = vpop.f32.mrb[81].mxu0 }
 0xab8   :  { %v2861_v2 = vpop.f32.mrb[82].mxu0 }
 0xab9   :  { %v1934_v8 = vpack.c.bf16 %v2861_v2, %v2860_v6  ;;  %v1873_v9 = vpop.f32.mrb[83].mxu0 }
 0xaba   :  { %v1933_v10 = vpack.c.bf16 %v1873_v9, %v1870_v7 }
 0xabc   :  { %2874 = vmatprep.subr.bf16.mxu1 %v1933_v10 }
 0xabd   :  { %2875 = vmatpush3.bf16.msra.mxu1 %v1933_v10 }
 0xabe   :  { %v2864_v11 = vpop.f32.mrb[84].mxu0  ;;  %2876 = vmatprep.subr.bf16.mxu1 %v1934_v8 }
 0xabf   :  { %v1886_v12 = vpop.f32.mrb[85].mxu0 }
 0xac0   :  { %v2865_v5 = vpop.f32.mrb[86].mxu0 }
 0xac1   :  { %v1936_v13 = vpack.c.bf16 %v2865_v5, %v2864_v11  ;;  %v1889_v14 = vpop.f32.mrb[87].mxu0  ;;  %2877 = vmatpush3.bf16.msra.mxu1 %v1934_v8 }
 0xac2   :  { %v1935_v15 = vpack.c.bf16 %v1889_v14, %v1886_v12 }
 0xac4   :  { %2878 = vmatprep.subr.bf16.mxu1 %v1935_v15 }
 0xac5   :  { %2879 = vmatpush3.bf16.msra.mxu1 %v1935_v15 }
 0xac6   :  { %v2868_v17 = vpop.f32.mrb[88].mxu0  ;;  %2880 = vmatprep.subr.bf16.mxu1 %v1936_v13 }
 0xac7   :  { %v1902_v18 = vpop.f32.mrb[89].mxu0 }
 0xac8   :  { %v2869_v19 = vpop.f32.mrb[90].mxu0 }
 0xac9   :  { %v1938_v20 = vpack.c.bf16 %v2869_v19, %v2868_v17  ;;  %v1905_v21 = vpop.f32.mrb[91].mxu0  ;;  %2881 = vmatpush3.bf16.msra.mxu1 %v1936_v13 }
 0xaca   :  { %v1937_v22 = vpack.c.bf16 %v1905_v21, %v1902_v18 }
 0xacc   :  { %2882 = vmatprep.subr.bf16.mxu1 %v1937_v22 }
 0xacd   :  { %2883 = vmatpush3.bf16.msra.mxu1 %v1937_v22 }
 0xace   :  { %v2872_v23 = vpop.f32.mrb[92].mxu0  ;;  %2884 = vmatprep.subr.bf16.mxu1 %v1938_v20 }
 0xacf   :  { %v1918_v24 = vpop.f32.mrb[93].mxu0 }
 0xad0   :  { %v2873_v25 = vpop.f32.mrb[94].mxu0 }
 0xad1   :  { %v1940_v27 = vpack.c.bf16 %v2873_v25, %v2872_v23  ;;  %v1921_v28 = vpop.f32.mrb[95].mxu0  ;;  %2885 = vmatpush3.bf16.msra.mxu1 %v1938_v20 }
 0xad2   :  { %v1939_v29 = vpack.c.bf16 %v1921_v28, %v1918_v24 }
 0xad4   :  { %2886 = vmatprep.subr.bf16.mxu1 %v1939_v29 }
 0xad5   :  { %2887 = vmatpush3.bf16.msra.mxu1 %v1939_v29 }
 0xad6   :  { %2888 = vmatprep.subr.bf16.mxu1 %v1940_v27 }
 0xad9   :  { %2889 = vmatpush3.bf16.msra.mxu1 %v1940_v27 }
 0xadc   :  { %2891 = vmatmul.mubr.bf16.vlgmr.msra.gmra.mrb[80].mxu1 %v3562_v59 }
 0xadd   :  { %2894 = vmatprep.mubr.bf16.mxu1 %v3565_v60 }
 0xae4   :  { %2895 = vmatmul.mubr.bf16.gmra.mrb[84].mxu1 %v3568_v61 }
 0xae5   :  { %2898 = vmatprep.mubr.bf16.mxu1 %v3571_v56 }
 0xaec   :  { %2899 = vmatmul.mubr.bf16.gmra.mrb[88].mxu1 %v3574_v62 }
 0xaed   :  { %2902 = vmatprep.mubr.bf16.mxu1 %v3577_v63 }
 0xaf4   :  { %2903 = vmatmul.mubr.bf16.gmra.mrb[92].mxu1 %v3580_v0 }
 0xbaf   :  { %v2892_v59 = vpop.f32.mrb[80].mxu1 }
 0xbb0   :  { %v1990_v60 = vadd.f32 %v2892_v59, %v2329_v26  ;;  %v1981_v61 = vpop.f32.mrb[81].mxu1 }
 0xbb1   :  { %v1982_v32 = vadd.f32 %v2329_v26, %v1981_v61  ;;  %v2893_v56 = vpop.f32.mrb[82].mxu1 }
 0xbb2   :  { %v1993_v33 = vadd.f32 %v2893_v56, %v2329_v26  ;;  %v1984_v62 = vpop.f32.mrb[83].mxu1  ;;  %v2049_v63 = vsel %vm2046_vm0, %v1990_v60, -inf }
 0xbb3   :  { %v1985_v0 = vadd.f32 %v2329_v26, %v1984_v62  ;;  %2067 = vmax.xlane.f32.xlu1 %v2049_v63  ;;  %v2047_v34 = vsel %vm2046_vm0, %v1982_v32, -inf }
 0xbb4   :  { %2063 = vmax.xlane.f32.xlu0 %v2047_v34  ;;  %v2050_v35 = vsel %vm2046_vm0, %v1993_v33, -inf }
 0xbb5   :  { %v2048_v48 = vsel %vm2046_vm0, %v1985_v0, -inf }
 0xbb7   :  { %2069 = vmax.xlane.f32.xlu1 %v2050_v35  ;;  %v2896_v47 = vpop.f32.mrb[84].mxu1 }
 0xbb8   :  { %v2006_v49 = vadd.f32 %v2896_v47, %v2329_v26  ;;  %v1997_v50 = vpop.f32.mrb[85].mxu1  ;;  %2065 = vmax.xlane.f32.xlu0 %v2048_v48 }
 0xbb9   :  { %v2897_v51 = vpop.f32.mrb[86].mxu1  ;;  %v1998_v53 = vadd.f32 %v2329_v26, %v1997_v50 }
 0xbba   :  { %v2009_v36 = vadd.f32 %v2897_v51, %v2329_v26  ;;  %v2000_v52 = vpop.f32.mrb[87].mxu1  ;;  %v2053_v37 = vsel %vm2046_vm0, %v2006_v49, -inf }
 0xbbb   :  { %v2001_v38 = vadd.f32 %v2329_v26, %v2000_v52  ;;  %v2051_v40 = vsel %vm2046_vm0, %v1998_v53, -inf }
 0xbbc   :  { %2075 = vmax.xlane.f32.xlu0 %v2053_v37  ;;  %v2054_v16 = vsel %vm2046_vm0, %v2009_v36, -inf }
 0xbbd   :  { %2077 = vmax.xlane.f32.xlu1 %v2054_v16  ;;  %v2052_v43 = vsel %vm2046_vm0, %v2001_v38, -inf }
 0xbbf   :  { %v2900_v39 = vpop.f32.mrb[88].mxu1 }
 0xbc0   :  { %v2022_v41 = vadd.f32 %v2900_v39, %v2329_v26  ;;  %v2013_v42 = vpop.f32.mrb[89].mxu1  ;;  %2071 = vmax.xlane.f32.xlu0 %v2051_v40 }
 0xbc1   :  { %v2901_v44 = vpop.f32.mrb[90].mxu1  ;;  %2073 = vmax.xlane.f32.xlu1 %v2052_v43  ;;  %v2014_v55 = vadd.f32 %v2329_v26, %v2013_v42 }
 0xbc2   :  { %v2025_v45 = vadd.f32 %v2901_v44, %v2329_v26  ;;  %v2016_v46 = vpop.f32.mrb[91].mxu1  ;;  %v2057_v54 = vsel %vm2046_vm0, %v2022_v41, -inf }
 0xbc3   :  { %v2017_v57 = vadd.f32 %v2329_v26, %v2016_v46  ;;  %v3621_v3 = vsel %vm2046_vm0, %v2014_v55, -inf }
 0xbc4   :  { %2083 = vmax.xlane.f32.xlu0 %v2057_v54  ;;  %v2058_v58 = vsel %vm2046_vm0, %v2025_v45, -inf }
 0xbc5   :  { %2085 = vmax.xlane.f32.xlu1 %v2058_v58  ;;  %v3626_v6 = vsel %vm2046_vm0, %v2017_v57, -inf }
 0xbc7   :  { %v2904_v1 = vpop.f32.mrb[92].mxu1 }
 0xbc8   :  { %v2029_v4 = vpop.f32.mrb[93].mxu1  ;;  %2079 = vmax.xlane.f32.xlu0 %v3621_v3  ;;  %v2038_v9 = vadd.f32 %v2904_v1, %v2329_v26 }
 0xbc9   :  { %v2030_v7 = vadd.f32 %v2329_v26, %v2029_v4  ;;  %v2905_v2 = vpop.f32.mrb[94].mxu1  ;;  %2081 = vmax.xlane.f32.xlu1 %v3626_v6 }
 0xbca   :  { %v2032_v8 = vpop.f32.mrb[95].mxu1  ;;  %v2041_v12 = vadd.f32 %v2905_v2, %v2329_v26  ;;  %v3641_v13 = vsel %vm2046_vm0, %v2038_v9, -inf }
 0xbcb   :  { %v2033_v10 = vadd.f32 %v2329_v26, %v2032_v8  ;;  %v3631_v11 = vsel %vm2046_vm0, %v2030_v7, -inf }
 0xbcc   :  { %2087 = vmax.xlane.f32.xlu0 %v3631_v11  ;;  %v3646_v14 = vsel %vm2046_vm0, %v2041_v12, -inf }
 0xbcd   :  { %v3636_v5 = vsel %vm2046_vm0, %v2033_v10, -inf }
 0xbce   :  { %2089 = vmax.xlane.f32.xlu1 %v3636_v5 }
 0xbd0   :  { %2091 = vmax.xlane.f32.xlu0 %v3641_v13 }
 0xbd2   :  { %2093 = vmax.xlane.f32.xlu1 %v3646_v14 }
 0xc40   :  { %v2068_v15 = vpop.xlane.xlu1 %2067 }
 0xc41   :  { %v3649_v17 = vsub.f32 %v2049_v63, %v2068_v15  ;;  %v2064_v18 = vpop.xlane.xlu0 %2063 }
 0xc42   :  { %v3651_v19 = vsub.f32 %v2047_v34, %v2064_v18 }
 0xc43   :  { %v2115_v20 = vmul.f32 1.442695, %v3649_v17 }
 0xc44   :  { %v2111_v21 = vmul.f32 1.442695, %v3651_v19  ;;  %v2070_v22 = vpop.xlane.xlu1 %2069 }
 0xc45   :  { %2983 = vpow2.f32 %v2115_v20  ;;  %v3655_v23 = vsub.f32 %v2050_v35, %v2070_v22  ;;  %v2066_v24 = vpop.xlane.xlu0 %2065 }
 0xc46   :  { %v3657_v25 = vsub.f32 %v2048_v48, %v2066_v24  ;;  %2985 = vpow2.f32 %v2111_v21 }
 0xc47   :  { %v2117_v27 = vmul.f32 1.442695, %v3655_v23 }
 0xc48   :  { %v2113_v28 = vmul.f32 1.442695, %v3657_v25 }
 0xc49   :  { %2987 = vpow2.f32 %v2117_v27  ;;  %v2076_v29 = vpop.xlane.xlu0 %2075 }
 0xc4a   :  { %v3661_v30 = vsub.f32 %v2053_v37, %v2076_v29  ;;  %v2078_v31 = vpop.xlane.xlu1 %2077  ;;  %2989 = vpow2.f32 %v2113_v28 }
 0xc4b   :  { %v3663_v26 = vsub.f32 %v2054_v16, %v2078_v31 }
 0xc4c   :  { %v2123_v59 = vmul.f32 1.442695, %v3661_v30 }
 0xc4d   :  { %v2125_v60 = vmul.f32 1.442695, %v3663_v26  ;;  %v2072_v61 = vpop.xlane.xlu0 %2071 }
 0xc4e   :  { %2991 = vpow2.f32 %v2123_v59  ;;  %v3667_v32 = vsub.f32 %v2051_v40, %v2072_v61  ;;  %v2074_v56 = vpop.xlane.xlu1 %2073 }
 0xc4f   :  { %v2984_v33 = vpop.eup %2983  ;;  %v3669_v62 = vsub.f32 %v2052_v43, %v2074_v56  ;;  %2993 = vpow2.f32 %v2125_v60 }
 0xc50   :  { %v2119_v63 = vmul.f32 1.442695, %v3667_v32  ;;  %2147 = vadd.xlane.f32.xlu0 %v2984_v33  ;;  %v2986_v35 = vpop.eup %2985 }
 0xc51   :  { %v2121_v0 = vmul.f32 1.442695, %v3669_v62  ;;  %v2084_v34 = vpop.xlane.xlu0 %2083 }
 0xc52   :  { %2995 = vpow2.f32 %v2119_v63  ;;  %v3673_v47 = vsub.f32 %v2057_v54, %v2084_v34  ;;  %v2086_v48 = vpop.xlane.xlu1 %2085 }
 0xc53   :  { %v2988_v49 = vpop.eup %2987  ;;  %v3675_v50 = vsub.f32 %v2058_v58, %v2086_v48  ;;  %2997 = vpow2.f32 %v2121_v0 }
 0xc54   :  { %v2131_v51 = vmul.f32 1.442695, %v3673_v47  ;;  %2149 = vadd.xlane.f32.xlu1 %v2988_v49  ;;  %2143 = vadd.xlane.f32.xlu0 %v2986_v35  ;;  %v2990_v38 = vpop.eup %2989 }
 0xc55   :  { %v2133_v36 = vmul.f32 1.442695, %v3675_v50  ;;  %v2080_v52 = vpop.xlane.xlu0 %2079 }
 0xc56   :  { %2999 = vpow2.f32 %v2131_v51  ;;  %v3680_v37 = vsub.f32 %v3621_v3, %v2080_v52  ;;  %v2082_v53 = vpop.xlane.xlu1 %2081 }
 0xc57   :  { %v3683_v16 = vsub.f32 %v3626_v6, %v2082_v53  ;;  %3001 = vpow2.f32 %v2133_v36 }
 0xc58   :  { %v2992_v39 = vpop.eup %2991  ;;  %v2127_v40 = vmul.f32 1.442695, %v3680_v37  ;;  %2145 = vadd.xlane.f32.xlu1 %v2990_v38 }
 0xc59   :  { %v2129_v41 = vmul.f32 1.442695, %v3683_v16  ;;  %2155 = vadd.xlane.f32.xlu0 %v2992_v39  ;;  %v2088_v42 = vpop.xlane.xlu0 %2087  ;;  %v2994_v44 = vpop.eup %2993 }
 0xc5a   :  { %3003 = vpow2.f32 %v2127_v40  ;;  %v3688_v43 = vsub.f32 %v3631_v11, %v2088_v42 }
 0xc5b   :  { %v2090_v45 = vpop.xlane.xlu1 %2089  ;;  %3005 = vpow2.f32 %v2129_v41 }
 0xc5c   :  { %v2996_v46 = vpop.eup %2995  ;;  %v2135_v54 = vmul.f32 1.442695, %v3688_v43  ;;  %v3692_v55 = vsub.f32 %v3636_v5, %v2090_v45  ;;  %2157 = vadd.xlane.f32.xlu1 %v2994_v44 }
 0xc5d   :  { %2151 = vadd.xlane.f32.xlu0 %v2996_v46  ;;  %v2092_v57 = vpop.xlane.xlu0 %2091  ;;  %v2998_v3 = vpop.eup %2997 }
 0xc5e   :  { %3007 = vpow2.f32 %v2135_v54  ;;  %v2137_v58 = vmul.f32 1.442695, %v3692_v55  ;;  %v3696_v1 = vsub.f32 %v3641_v13, %v2092_v57 }
 0xc5f   :  { %v2094_v4 = vpop.xlane.xlu1 %2093 }
 0xc60   :  { %v3000_v6 = vpop.eup %2999  ;;  %3009 = vpow2.f32 %v2137_v58  ;;  %v2139_v7 = vmul.f32 1.442695, %v3696_v1  ;;  %v3700_v2 = vsub.f32 %v3646_v14, %v2094_v4  ;;  %2153 = vadd.xlane.f32.xlu1 %v2998_v3 }
 0xc61   :  { %2163 = vadd.xlane.f32.xlu0 %v3000_v6  ;;  %v3002_v9 = vpop.eup %3001 }
 0xc62   :  { %3011 = vpow2.f32 %v2139_v7  ;;  %v2141_v8 = vmul.f32 1.442695, %v3700_v2 }
 0xc64   :  { %v3004_v10 = vpop.eup %3003  ;;  %3013 = vpow2.f32 %v2141_v8  ;;  %2165 = vadd.xlane.f32.xlu1 %v3002_v9 }
 0xc65   :  { %2159 = vadd.xlane.f32.xlu0 %v3004_v10  ;;  %v3006_v11 = vpop.eup %3005 }
 0xc68   :  { %v3008_v12 = vpop.eup %3007  ;;  %2161 = vadd.xlane.f32.xlu1 %v3006_v11 }
 0xc69   :  { %2167 = vadd.xlane.f32.xlu0 %v3008_v12 }
 0xc6a   :  { %v3010_v5 = vpop.eup %3009 }
 0xc6c   :  { %v3012_v13 = vpop.eup %3011  ;;  %2169 = vadd.xlane.f32.xlu1 %v3010_v5 }
 0xc6d   :  { %2171 = vadd.xlane.f32.xlu0 %v3012_v13 }
 0xc6e   :  { %v3014_v14 = vpop.eup %3013 }
 0xc70   :  { %2173 = vadd.xlane.f32.xlu1 %v3014_v14 }
 0xcdd   :  { %v2148_v15 = vpop.xlane.xlu0 %2147 }
 0xcde   :  { %3015 = vlog2.f32 %v2148_v15 }
 0xce1   :  { %v2150_v18 = vpop.xlane.xlu1 %2149  ;;  %v2144_v20 = vpop.xlane.xlu0 %2143 }
 0xce2   :  { %3017 = vlog2.f32 %v2150_v18 }
 0xce3   :  { %3019 = vlog2.f32 %v2144_v20 }
 0xce5   :  { %v2146_v21 = vpop.xlane.xlu1 %2145 }
 0xce6   :  { %3021 = vlog2.f32 %v2146_v21  ;;  %v2156_v22 = vpop.xlane.xlu0 %2155 }
 0xce7   :  { %3023 = vlog2.f32 %v2156_v22 }
 0xce8   :  { %v3016_v24 = vpop.eup %3015 }
 0xce9   :  { %v2180_v27 = vmul.f32 0.6931472, %v3016_v24  ;;  %v2158_v28 = vpop.xlane.xlu1 %2157 }
 0xcea   :  { %3025 = vlog2.f32 %v2158_v28  ;;  %v2152_v29 = vpop.xlane.xlu0 %2151 }
 0xceb   :  { %v2209_v31 = vsub.f32 %v3649_v17, %v2180_v27  ;;  %3027 = vlog2.f32 %v2152_v29 }
 0xcec   :  { %v3018_v59 = vpop.eup %3017 }
 0xced   :  { %v3020_v60 = vpop.eup %3019  ;;  %2225 = vst [vmem:[#allocation16 + $0x10] sm:$0xff] %v2209_v31  ;;  %v2182_v61 = vmul.f32 0.6931472, %v3018_v59  ;;  %v2154_v56 = vpop.xlane.xlu1 %2153 }
 0xcee   :  { %v2176_v33 = vmul.f32 0.6931472, %v3020_v60  ;;  %3029 = vlog2.f32 %v2154_v56  ;;  %v2164_v63 = vpop.xlane.xlu0 %2163 }
 0xcef   :  { %v2210_v0 = vsub.f32 %v3655_v23, %v2182_v61  ;;  %3031 = vlog2.f32 %v2164_v63 }
 0xcf0   :  { %v3022_v34 = vpop.eup %3021  ;;  %v2207_v35 = vsub.f32 %v3651_v19, %v2176_v33 }
 0xcf1   :  { %v3024_v48 = vpop.eup %3023  ;;  %2226 = vst [vmem:[#allocation16 + $0x18] sm:$0xff] %v2210_v0  ;;  %v2178_v49 = vmul.f32 0.6931472, %v3022_v34  ;;  %v2166_v51 = vpop.xlane.xlu1 %2165 }
 0xcf2   :  { %2223 = vst [vmem:[#allocation16] sm:$0xff] %v2207_v35  ;;  %v2188_v17 = vmul.f32 0.6931472, %v3024_v48  ;;  %3033 = vlog2.f32 %v2166_v51  ;;  %v2160_v36 = vpop.xlane.xlu0 %2159 }
 0xcf3   :  { %v2208_v52 = vsub.f32 %v3657_v25, %v2178_v49  ;;  %3035 = vlog2.f32 %v2160_v36 }
 0xcf4   :  { %v3026_v53 = vpop.eup %3025  ;;  %v2213_v38 = vsub.f32 %v3661_v30, %v2188_v17 }
 0xcf5   :  { %v3028_v39 = vpop.eup %3027  ;;  %2224 = vst [vmem:[#allocation16 + $0x8] sm:$0xff] %v2208_v52  ;;  %v2190_v23 = vmul.f32 0.6931472, %v3026_v53  ;;  %v2162_v40 = vpop.xlane.xlu1 %2161 }
 0xcf6   :  { %2229 = vst [vmem:[#allocation16 + $0x30] sm:$0xff] %v2213_v38  ;;  %v2184_v19 = vmul.f32 0.6931472, %v3028_v39  ;;  %3037 = vlog2.f32 %v2162_v40  ;;  %v2168_v41 = vpop.xlane.xlu0 %2167 }
 0xcf7   :  { %v2214_v42 = vsub.f32 %v3663_v26, %v2190_v23  ;;  %3039 = vlog2.f32 %v2168_v41 }
 0xcf8   :  { %v3030_v44 = vpop.eup %3029  ;;  %v2211_v45 = vsub.f32 %v3667_v32, %v2184_v19 }
 0xcf9   :  { %v3032_v46 = vpop.eup %3031  ;;  %2230 = vst [vmem:[#allocation16 + $0x38] sm:$0xff] %v2214_v42  ;;  %v2186_v25 = vmul.f32 0.6931472, %v3030_v44  ;;  %v2170_v54 = vpop.xlane.xlu1 %2169 }
 0xcfa   :  { %2227 = vst [vmem:[#allocation16 + $0x20] sm:$0xff] %v2211_v45  ;;  %v2196_v30 = vmul.f32 0.6931472, %v3032_v46  ;;  %3041 = vlog2.f32 %v2170_v54  ;;  %v2172_v57 = vpop.xlane.xlu0 %2171 }
 0xcfb   :  { %v2212_v58 = vsub.f32 %v3669_v62, %v2186_v25  ;;  %3043 = vlog2.f32 %v2172_v57 }
 0xcfc   :  { %v3034_v3 = vpop.eup %3033  ;;  %v2217_v4 = vsub.f32 %v3673_v47, %v2196_v30 }
 0xcfd   :  { %v3036_v6 = vpop.eup %3035  ;;  %2228 = vst [vmem:[#allocation16 + $0x28] sm:$0xff] %v2212_v58  ;;  %v2198_v26 = vmul.f32 0.6931472, %v3034_v3  ;;  %v2174_v7 = vpop.xlane.xlu1 %2173 }
 0xcfe   :  { %2233 = vst [vmem:[#allocation16 + $0x50] sm:$0xff] %v2217_v4  ;;  %v2192_v32 = vmul.f32 0.6931472, %v3036_v6  ;;  %3045 = vlog2.f32 %v2174_v7 }
 0xcff   :  { %v2218_v8 = vsub.f32 %v3675_v50, %v2198_v26 }
 0xd00   :  { %v3038_v9 = vpop.eup %3037  ;;  %v2215_v10 = vsub.f32 %v3680_v37, %v2192_v32 }
 0xd01   :  { %v3040_v11 = vpop.eup %3039  ;;  %2234 = vst [vmem:[#allocation16 + $0x58] sm:$0xff] %v2218_v8  ;;  %v2194_v12 = vmul.f32 0.6931472, %v3038_v9 }
 0xd02   :  { %2231 = vst [vmem:[#allocation16 + $0x40] sm:$0xff] %v2215_v10  ;;  %v2200_v62 = vmul.f32 0.6931472, %v3040_v11 }
 0xd03   :  { %v2216_v5 = vsub.f32 %v3683_v16, %v2194_v12 }
 0xd04   :  { %v3042_v47 = vpop.eup %3041  ;;  %v2219_v13 = vsub.f32 %v3688_v43, %v2200_v62 }
 0xd05   :  { %v3044_v14 = vpop.eup %3043  ;;  %2232 = vst [vmem:[#allocation16 + $0x48] sm:$0xff] %v2216_v5  ;;  %v2202_v15 = vmul.f32 0.6931472, %v3042_v47 }
 0xd06   :  { %2235 = vst [vmem:[#allocation16 + $0x60] sm:$0xff] %v2219_v13  ;;  %v2204_v18 = vmul.f32 0.6931472, %v3044_v14 }
 0xd07   :  { %v2220_v50 = vsub.f32 %v3692_v55, %v2202_v15 }
 0xd08   :  { %v3046_v20 = vpop.eup %3045  ;;  %v2221_v37 = vsub.f32 %v3696_v1, %v2204_v18 }
 0xd09   :  { %2236 = vst [vmem:[#allocation16 + $0x68] sm:$0xff] %v2220_v50  ;;  %v2206_v21 = vmul.f32 0.6931472, %v3046_v20 }
 0xd0a   :  { %2237 = vst [vmem:[#allocation16 + $0x70] sm:$0xff] %v2221_v37 }
 0xd0b   :  { %v2222_v16 = vsub.f32 %v3700_v2, %v2206_v21 }
 0xd0d   :  { %2238 = vst [vmem:[#allocation16 + $0x78] sm:$0xff] %v2222_v16 }
 0xd0e   :  { %3242 = shalt.err (!%p3239_p12)
}
 0xd0f   :  { %s3243_s6 = scalar_lea.hbm %s3745_s14, 2048 }
 0xd10   :  { %p3244_p13 = scmp.ne.s32.totalorder %s3745_s14, %s3243_s6  ;;  %p3247_p0 = scmp.lt.u32.totalorder %s3243_s6, %s3745_s14 }
 0xd12   :  { %p3249_p1 = pnand %p3247_p0, %p3244_p13 }
 0xd14   :  { %3252 = shalt.err (!%p3249_p1)
}
 0xd15   :  { %s3276_s16 = smov 128   ;;  %s3277_s22 = smov 8  }
 0xd16   :  { %2250 = dma.vmem_to_hbm [thread:$0]  %s2245_s15, 2048, %s3745_s14, [#allocation4], %s3276_s16, %s3276_s16, %s3277_s22  }
 0xd17   :  { %3263 = dma.done.wait [#allocation4], 2048  }
 0xd18   :  { %3264 = vsyncadd [#allocation4], 4294965248 }
 0xd19   :  { %2254 = vsyncpa [#allocation3], 1 }
 0xd1a   :  { %2255 = vsyncpa [#allocation6], 1 }
 0xd1b   :  { %2256 = vsyncpa [#allocation9], 1 }
 0xd1c   :  { %2257 = vsyncpa [#allocation12], 1 }
 0xd1d   :  { %2258 = vsyncpa [#allocation15], 1 }
 0xd1e   :  { %2259 = vsyncpa [#allocation4], 1 }

</bundles_post_ra>
